<compile_context>
chip_gen: v7x
topology: tpu7x:2x2x1
jax: 0.10.0
libtpu: 0.0.40
codegen_flags: <defaults>
</compile_context>

<pallas_src>
import functools
import math

import jax
import jax.numpy as jnp
from jax.experimental import pallas as pl
from jax.experimental.pallas import tpu as pltpu


# ----------------------------------------------------------------------------
# Kernel bodies
# ----------------------------------------------------------------------------
def _mm_single_kernel(a_ref, b_ref, o_ref):
    # a_ref: (tm, K)  b_ref: (K, N) fully resident  o_ref: (tm, N)
    o_ref[...] = jnp.dot(
        a_ref[...], b_ref[...], preferred_element_type=jnp.float32
    ).astype(o_ref.dtype)


def _mm_bias_single_kernel(a_ref, b_ref, bias_ref, o_ref):
    acc = jnp.dot(a_ref[...], b_ref[...], preferred_element_type=jnp.float32)
    o_ref[...] = (acc + bias_ref[...]).astype(o_ref.dtype)


def _mm_multi_kernel(a_ref, b_ref, o_ref, acc_ref):
    # grid = (M//tm, K//tk); the reduction axis k is last ("arbitrary")
    k = pl.program_id(1)

    @pl.when(k == 0)
    def _():
        acc_ref[...] = jnp.zeros_like(acc_ref)

    acc_ref[...] += jnp.dot(
        a_ref[...], b_ref[...], preferred_element_type=jnp.float32
    )

    @pl.when(k == pl.num_programs(1) - 1)
    def _():
        o_ref[...] = acc_ref[...].astype(o_ref.dtype)


def _mm_bias_multi_kernel(a_ref, b_ref, bias_ref, o_ref, acc_ref):
    k = pl.program_id(1)

    @pl.when(k == 0)
    def _():
        acc_ref[...] = jnp.zeros_like(acc_ref)

    acc_ref[...] += jnp.dot(
        a_ref[...], b_ref[...], preferred_element_type=jnp.float32
    )

    @pl.when(k == pl.num_programs(1) - 1)
    def _():
        o_ref[...] = (acc_ref[...] + bias_ref[...]).astype(o_ref.dtype)


# ----------------------------------------------------------------------------
# Tiled matmul (+ optional bias) dispatcher
# ----------------------------------------------------------------------------
def _round_up(v, m):
    return ((v + m - 1) // m) * m


def _divisors_desc(n, cap):
    cap = max(1, cap)
    ds = [d for d in range(1, n + 1) if n % d == 0 and d <= cap]
    if not ds:
        ds = [1]
    return sorted(ds, reverse=True)


def _call_single(a, b, bias_row, out_dtype, tm, vmem_limit):
    Mp, Kp = a.shape
    Nout = b.shape[1]
    in_specs = [
        pl.BlockSpec((tm, Kp), lambda i: (i, 0)),
        pl.BlockSpec((Kp, Nout), lambda i: (0, 0)),  # resident RHS
    ]
    args = (a, b)
    kernel = _mm_single_kernel
    if bias_row is not None:
        in_specs.append(pl.BlockSpec((1, Nout), lambda i: (0, 0)))  # resident bias
        args = (a, b, bias_row)
        kernel = _mm_bias_single_kernel
    return pl.pallas_call(
        kernel,
        out_shape=jax.ShapeDtypeStruct((Mp, Nout), out_dtype),
        grid_spec=pltpu.PrefetchScalarGridSpec(
            num_scalar_prefetch=0,
            grid=(Mp // tm,),
            in_specs=in_specs,
            out_specs=pl.BlockSpec((tm, Nout), lambda i: (i, 0)),
        ),
        compiler_params=pltpu.CompilerParams(
            dimension_semantics=("parallel",),
            vmem_limit_bytes=vmem_limit,
        ),
    )(*args)


def _call_multi(a, b, bias_row, out_dtype, tm, tk, vmem_limit):
    Mp, Kp = a.shape
    Nout = b.shape[1]
    in_specs = [
        pl.BlockSpec((tm, tk), lambda i, k: (i, k)),
        pl.BlockSpec((tk, Nout), lambda i, k: (k, 0)),
    ]
    args = (a, b)
    kernel = _mm_multi_kernel
    if bias_row is not None:
        in_specs.append(pl.BlockSpec((1, Nout), lambda i, k: (0, 0)))
        args = (a, b, bias_row)
        kernel = _mm_bias_multi_kernel
    return pl.pallas_call(
        kernel,
        out_shape=jax.ShapeDtypeStruct((Mp, Nout), out_dtype),
        grid_spec=pltpu.PrefetchScalarGridSpec(
            num_scalar_prefetch=0,
            grid=(Mp // tm, Kp // tk),
            in_specs=in_specs,
            out_specs=pl.BlockSpec((tm, Nout), lambda i, k: (i, 0)),
            scratch_shapes=[pltpu.VMEM((tm, Nout), jnp.float32)],
        ),
        compiler_params=pltpu.CompilerParams(
            dimension_semantics=("parallel", "arbitrary"),
            vmem_limit_bytes=vmem_limit,
        ),
    )(*args)


def _pallas_matmul(a, b, bias_row, out_dtype, *, tm_pref, tk_pref,
                   vmem_budget, vmem_limit):
    """out = a @ b (+ bias_row). a:(Mp,Kp), b:(Kp,Nout); dims multiples of 128."""
    Mp, Kp = a.shape
    Nout = b.shape[1]
    ea = a.dtype.itemsize
    eb = b.dtype.itemsize
    eo = jnp.dtype(out_dtype).itemsize
    bias_bytes = (2 * Nout * 4) if bias_row is not None else 0

    m_blocks = Mp // 128
    k_blocks = Kp // 128
    tm_cands = _divisors_desc(m_blocks, tm_pref // 128)

    # Preferred path: RHS fully resident, LHS streamed exactly once, no acc.
    for tmb in tm_cands:
        tm = 128 * tmb
        use = 2 * tm * Kp * ea + 2 * Kp * Nout * eb + 2 * tm * Nout * eo + bias_bytes
        if use <= vmem_budget:
            return _call_single(a, b, bias_row, out_dtype, tm, vmem_limit)

    # Fallback: k-tiled reduction with f32 accumulator scratch.  Largest tm
    # first (minimizes how many times the RHS is re-streamed across row tiles).
    tk_cands = _divisors_desc(k_blocks, tk_pref // 128)
    for tmb in tm_cands:
        tm = 128 * tmb
        for tkb in tk_cands:
            tk = 128 * tkb
            use = (2 * tm * tk * ea + 2 * tk * Nout * eb + 2 * tm * Nout * eo
                   + tm * Nout * 4 + bias_bytes)
            if use <= vmem_budget:
                return _call_multi(a, b, bias_row, out_dtype, tm, tk, vmem_limit)

    # Last resort: smallest legal tiles.
    return _call_multi(a, b, bias_row, out_dtype, 128, 128, vmem_limit)


# ----------------------------------------------------------------------------
# GCN layer wrapper: out = adj @ (x @ W) + bias
# ----------------------------------------------------------------------------
@functools.partial(
    jax.jit,
    static_argnames=("tm", "tk", "compute_dtype", "vmem_budget_bytes",
                     "vmem_limit_bytes"),
)
def gcn_layer(x, adj, weight, bias=None, *, tm=512, tk=1024, compute_dtype=None,
              vmem_budget_bytes=32 * 1024 * 1024,
              vmem_limit_bytes=48 * 1024 * 1024):
    """GCNLayers1 forward: adj @ (x @ weight) (+ bias), both matmuls in Pallas."""
    N, F_in = x.shape
    F_in2, F_out = weight.shape
    assert F_in2 == F_in
    assert adj.shape == (N, N)

    out_dtype = x.dtype
    cdt = compute_dtype if compute_dtype is not None else x.dtype

    # Pad to lane-dense multiples of 128; zeros preserve semantics (extra adj
    # cols hit zero support rows, extra W/x cols are zero).  No-op when aligned.
    Np = _round_up(N, 128)
    Fi = _round_up(F_in, 128)
    Fo = _round_up(F_out, 128)

    x_p = jnp.pad(x, ((0, Np - N), (0, Fi - F_in))).astype(cdt)
    adj_p = jnp.pad(adj, ((0, Np - N), (0, Np - N))).astype(cdt)
    w_p = jnp.pad(weight, ((0, Fi - F_in), (0, Fo - F_out))).astype(cdt)
    if bias is not None:
        b_p = jnp.pad(bias.astype(jnp.float32), (0, Fo - F_out)).reshape(1, Fo)
    else:
        b_p = None

    # kernel 1: support = x @ W   (W resident; intermediate kept in compute dtype)
    support = _pallas_matmul(
        x_p, w_p, None, cdt,
        tm_pref=tm, tk_pref=tk,
        vmem_budget=vmem_budget_bytes, vmem_limit=vmem_limit_bytes,
    )

    # kernel 2: out = adj @ support + bias   (support resident whenever it fits)
    out_p = _pallas_matmul(
        adj_p, support, b_p, out_dtype,
        tm_pref=tm, tk_pref=tk,
        vmem_budget=vmem_budget_bytes, vmem_limit=vmem_limit_bytes,
    )

    return out_p[:N, :F_out]


# ----------------------------------------------------------------------------
# Demo / correctness checks
# ----------------------------------------------------------------------------
def _init_params(key, f_in, f_out):
    # matches GCNLayers1.reset_parameters: uniform(-stdv, stdv), stdv=1/sqrt(f_out)
    kw, kb = jax.random.split(key)
    stdv = 1.0 / math.sqrt(f_out)
    w = jax.random.uniform(kw, (f_in, f_out), jnp.float32, -stdv, stdv)
    b = jax.random.uniform(kb, (f_out,), jnp.float32, -stdv, stdv)
    return w, b


def _make_inputs(key, n, f_in):
    kx, ka = jax.random.split(key)
    x = jax.random.normal(kx, (n, f_in), jnp.float32)
    adj_raw = jax.random.uniform(ka, (n, n), jnp.float32)
    adj = adj_raw / jnp.sum(adj_raw, axis=1, keepdims=True)  # row-normalized
    return x, adj


def _reference(x, adj, w, b=None):
    out = adj @ (x @ w)
    return out if b is None else out + b


if __name__ == "__main__":
    key = jax.random.PRNGKey(0)
    k_in, k_p, k_in2, k_p2 = jax.random.split(key, 4)

    # --- test 1: default path (support fully resident, single-pass over adj) --
    N, F_in, F_out = 512, 256, 128
    x, adj = _make_inputs(k_in, N, F_in)
    w, b = _init_params(k_p, F_in, F_out)

    out = jax.block_until_ready(gcn_layer(x, adj, w, b))
    ref = _reference(x, adj, w, b)
    assert out.shape == (N, F_out)
    assert jnp.allclose(out, ref, atol=1e-3, rtol=1e-3), "test1 mismatch"

    # --- test 2: tiny VMEM budget -> forces k-tiled accumulator path ----------
    out2 = jax.block_until_ready(
        gcn_layer(x, adj, w, b, vmem_budget_bytes=1 << 20)
    )
    assert jnp.allclose(out2, ref, atol=1e-3, rtol=1e-3), "test2 mismatch"

    # --- test 3: ragged shapes (padding path), no bias -------------------------
    N3, Fi3, Fo3 = 200, 96, 72
    x3, adj3 = _make_inputs(k_in2, N3, Fi3)
    w3, _ = _init_params(k_p2, Fi3, Fo3)
    out3 = jax.block_until_ready(gcn_layer(x3, adj3, w3, None))
    ref3 = _reference(x3, adj3, w3, None)
    assert out3.shape == (N3, Fo3)
    assert jnp.allclose(out3, ref3, atol=1e-3, rtol=1e-3), "test3 mismatch"

    # --- test 4: bf16 MXU inputs (v6e/v7x path), f32 accumulation --------------
    out4 = jax.block_until_ready(
        gcn_layer(x, adj, w, b, compute_dtype=jnp.bfloat16)
    )
    assert jnp.allclose(out4, ref, atol=3e-2, rtol=3e-2), "test4 mismatch"

    print("KERNEL_OK")
</pallas_src>

<mosaic_0001>
module attributes {stable_mosaic.version = 11 : i64} {
  func.func @_mm_bias_single_kernel(%arg0: i32, %arg1: memref<512x512xf32, #tpu.memory_space<vmem>>, %arg2: memref<512x128xf32, #tpu.memory_space<vmem>>, %arg3: memref<1x128xf32, #tpu.memory_space<vmem>>, %arg4: memref<512x128xf32, #tpu.memory_space<vmem>>) attributes {dimension_semantics = [#tpu.dimension_semantics<parallel>], iteration_bounds = array<i64: 1>, scalar_prefetch = 0 : i64, scratch_operands = 0 : i64, tpu.core_type = #tpu.core_type<tc>, window_params = [{transform_indices = @transform_0, window_bounds = array<i64: 512, 512>}, {pipeline_mode = #tpu.pipeline_mode<synchronous>, transform_indices = @transform_1, window_bounds = array<i64: 512, 128>}, {pipeline_mode = #tpu.pipeline_mode<synchronous>, transform_indices = @transform_2, window_bounds = array<i64: 1, 128>}, {transform_indices = @transform_3, window_bounds = array<i64: 512, 128>}]} {
    %c0 = arith.constant 0 : index
    %c0_0 = arith.constant 0 : index
    %0 = vector.load %arg1[%c0, %c0_0] : memref<512x512xf32, #tpu.memory_space<vmem>>, vector<512x512xf32>
    %c0_1 = arith.constant 0 : index
    %c0_2 = arith.constant 0 : index
    %1 = vector.load %arg2[%c0_1, %c0_2] : memref<512x128xf32, #tpu.memory_space<vmem>>, vector<512x128xf32>
    %cst = arith.constant dense<0.000000e+00> : vector<512x128xf32>
    %2 = tpu.matmul %0, %1, %cst {dimension_numbers = #tpu.dot_dimension_numbers<[1], [0], [0], [1], [0, 0, 1, 1], [], []>} : vector<512x512xf32>, vector<512x128xf32>, vector<512x128xf32> -> vector<512x128xf32>
    %c0_3 = arith.constant 0 : index
    %c0_4 = arith.constant 0 : index
    %3 = vector.load %arg3[%c0_3, %c0_4] : memref<1x128xf32, #tpu.memory_space<vmem>>, vector<1x128xf32>
    %4 = vector.broadcast %3 : vector<1x128xf32> to vector<512x128xf32>
    %5 = arith.addf %2, %4 : vector<512x128xf32>
    %c0_5 = arith.constant 0 : index
    %c0_6 = arith.constant 0 : index
    %6 = vector.load %arg4[%c0_5, %c0_6] : memref<512x128xf32, #tpu.memory_space<vmem>>, vector<512x128xf32>
    tpu.vector_store %arg4[%c0_5, %c0_6], %5 {strides = array<i32>} : memref<512x128xf32, #tpu.memory_space<vmem>>, vector<512x128xf32>,
    return
  }
  func.func @transform_0(%arg0: i32) -> (i32, i32) {
    %c0_i32 = arith.constant 0 : i32
    %c0_i32_0 = arith.constant 0 : i32
    return %arg0, %c0_i32 : i32, i32
  }
  func.func @transform_1(%arg0: i32) -> (i32, i32) {
    %c0_i32 = arith.constant 0 : i32
    %c0_i32_0 = arith.constant 0 : i32
    %c0_i32_1 = arith.constant 0 : i32
    return %c0_i32, %c0_i32_0 : i32, i32
  }
  func.func @transform_2(%arg0: i32) -> (i32, i32) {
    %c0_i32 = arith.constant 0 : i32
    %c0_i32_0 = arith.constant 0 : i32
    %c0_i32_1 = arith.constant 0 : i32
    return %c0_i32, %c0_i32_0 : i32, i32
  }
  func.func @transform_3(%arg0: i32) -> (i32, i32) {
    %c0_i32 = arith.constant 0 : i32
    %c0_i32_0 = arith.constant 0 : i32
    return %arg0, %c0_i32 : i32, i32
  }
}

module attributes {stable_mosaic.version = 11 : i64} {
  func.func @_mm_single_kernel(%arg0: i32, %arg1: memref<512x256xf32, #tpu.memory_space<vmem>>, %arg2: memref<256x128xf32, #tpu.memory_space<vmem>>, %arg3: memref<512x128xf32, #tpu.memory_space<vmem>>) attributes {dimension_semantics = [#tpu.dimension_semantics<parallel>], iteration_bounds = array<i64: 1>, scalar_prefetch = 0 : i64, scratch_operands = 0 : i64, tpu.core_type = #tpu.core_type<tc>, window_params = [{transform_indices = @transform_0, window_bounds = array<i64: 512, 256>}, {pipeline_mode = #tpu.pipeline_mode<synchronous>, transform_indices = @transform_1, window_bounds = array<i64: 256, 128>}, {transform_indices = @transform_2, window_bounds = array<i64: 512, 128>}]} {
    %c0 = arith.constant 0 : index
    %c0_0 = arith.constant 0 : index
    %0 = vector.load %arg1[%c0, %c0_0] : memref<512x256xf32, #tpu.memory_space<vmem>>, vector<512x256xf32>
    %c0_1 = arith.constant 0 : index
    %c0_2 = arith.constant 0 : index
    %1 = vector.load %arg2[%c0_1, %c0_2] : memref<256x128xf32, #tpu.memory_space<vmem>>, vector<256x128xf32>
    %cst = arith.constant dense<0.000000e+00> : vector<512x128xf32>
    %2 = tpu.matmul %0, %1, %cst {dimension_numbers = #tpu.dot_dimension_numbers<[1], [0], [0], [1], [0, 0, 1, 1], [], []>} : vector<512x256xf32>, vector<256x128xf32>, vector<512x128xf32> -> vector<512x128xf32>
    %c0_3 = arith.constant 0 : index
    %c0_4 = arith.constant 0 : index
    %3 = vector.load %arg3[%c0_3, %c0_4] : memref<512x128xf32, #tpu.memory_space<vmem>>, vector<512x128xf32>
    tpu.vector_store %arg3[%c0_3, %c0_4], %2 {strides = array<i32>} : memref<512x128xf32, #tpu.memory_space<vmem>>, vector<512x128xf32>,
    return
  }
  func.func @transform_0(%arg0: i32) -> (i32, i32) {
    %c0_i32 = arith.constant 0 : i32
    %c0_i32_0 = arith.constant 0 : i32
    return %arg0, %c0_i32 : i32, i32
  }
  func.func @transform_1(%arg0: i32) -> (i32, i32) {
    %c0_i32 = arith.constant 0 : i32
    %c0_i32_0 = arith.constant 0 : i32
    %c0_i32_1 = arith.constant 0 : i32
    return %c0_i32, %c0_i32_0 : i32, i32
  }
  func.func @transform_2(%arg0: i32) -> (i32, i32) {
    %c0_i32 = arith.constant 0 : i32
    %c0_i32_0 = arith.constant 0 : i32
    return %arg0, %c0_i32 : i32, i32
  }
}

</mosaic_0001>

<bundles_post_ra>
// kernel: gcn_layer.2
= control target key start
LH: loop header
LB: loop body
LE: loop exit
PB: predicated region body
PF: predicated region fallthrough
CT: control target
= control target key end

     0   :  { %7 = vsyncpa [#allocation3], 0  ;;  %s1059_s0 = inlined_call_operand.hbm [shape: f32[512,256], index: 0, kind: input, shape index: {}]   ;;  %s1060_s1 = inlined_call_operand.hbm [shape: f32[256,128], index: 1, kind: input, shape index: {}]   ;;  %s1061_s2 = inlined_call_operand.vmem [shape: f32[512,128], index: 2, kind: output, shape index: {}]  }
   0x1   :  { %8 = vsyncpa [#allocation5], 0  ;;  %s789_s9 = smov [#allocation2]   ;;  %s741_s13 = scalar_lea.hbm %s1059_s0, 16384 }
   0x2   :  { %s14_s10 = sshll.u32 %s789_s9, 4  ;;  %p742_p0 = scmp.ne.s32.totalorder %s1059_s0, %s741_s13  ;;  %s15_s10 = int_to_ptr.vmem [resolvable:$true] %s14_s10 }
   0x3   :  { %p745_p1 = scmp.lt.u32.totalorder %s741_s13, %s1059_s0 }
   0x5   :  { %p747_p2 = pnand %p745_p1, %p742_p0 }
   0x7   :  { %750 = shalt.err (!%p747_p2)
}
   0x8   :  { %s751_s18 = scalar_lea.vmem %s15_s10, 16384  ;;  %p756_p4 = scmp.lt.s32.totalorder %s15_s10, %s15_s10 }
   0x9   :  { %p752_p3 = scmp.ne.s32.totalorder %s15_s10, %s751_s18  ;;  %p757_p5 = scmp.lt.s32.totalorder %s751_s18, %s751_s18 }
   0xb   :  { %p758_p6 = por %p757_p5, %p756_p4 }
   0xd   :  { %p759_p7 = pnand %p758_p6, %p752_p3 }
   0xf   :  { %762 = shalt.err (!%p759_p7)
}
  0x10   :  { %s790_s19 = smov 256   ;;  %s791_s20 = smov 16  }
  0x11   :  { %20 = dma.hbm_to_vmem [thread:$0]  %s1059_s0, 16384, %s15_s10, [#allocation3], %s790_s19, %s790_s19, %s791_s20  }
  0x12   :  { %s792_s23 = smov [#allocation4]   ;;  %s763_s27 = scalar_lea.hbm %s1060_s1, 4096 }
  0x13   :  { %s26_s24 = sshll.u32 %s792_s23, 4  ;;  %p764_p8 = scmp.ne.s32.totalorder %s1060_s1, %s763_s27  ;;  %s27_s24 = int_to_ptr.vmem [resolvable:$true] %s26_s24 }
  0x14   :  { %p767_p9 = scmp.lt.u32.totalorder %s763_s27, %s1060_s1 }
  0x16   :  { %p769_p10 = pnand %p767_p9, %p764_p8 }
  0x18   :  { %772 = shalt.err (!%p769_p10)
}
  0x19   :  { %s773_s4 = scalar_lea.vmem %s27_s24, 4096  ;;  %p778_p12 = scmp.lt.s32.totalorder %s27_s24, %s27_s24 }
  0x1a   :  { %p774_p11 = scmp.ne.s32.totalorder %s27_s24, %s773_s4  ;;  %p779_p13 = scmp.lt.s32.totalorder %s773_s4, %s773_s4 }
  0x1c   :  { %p780_p0 = por %p779_p13, %p778_p12 }
  0x1e   :  { %p781_p1 = pnand %p780_p0, %p774_p11 }
  0x20   :  { %784 = shalt.err (!%p781_p1)
}
  0x21   :  { %s793_s0 = smov 128   ;;  %s794_s5 = smov 8  }
  0x22   :  { %32 = dma.hbm_to_vmem [thread:$0]  %s1060_s1, 4096, %s27_s24, [#allocation5], %s793_s0, %s793_s0, %s794_s5  }
  0x23   :  { %785 = dma.done.wait [#allocation3], 16384  }
  0x24   :  { %786 = vsyncadd [#allocation3], 4294950912 }
  0x25   :  { %787 = dma.done.wait [#allocation5], 4096  }
  0x26   :  { %788 = vsyncadd [#allocation5], 4294963200  ;;  %v795_v0 = vmov 0.0|0.0   ;;  %v167_v1 = vld [vmem:[#allocation4] sm:$0xff]  ;;  %v168_v2 = vld [vmem:[#allocation4 + $0x8] sm:$0xff] }
  0x27   :  { %654 = vmatprep.subr.bf16.mxu0 %v795_v0  ;;  %702 = vmatprep.subr.bf16.mxu1 %v795_v0  ;;  %v169_v3 = vld [vmem:[#allocation4 + $0x10] sm:$0xff]  ;;  %v655_v4 = vpack.c.bf16 %v168_v2, %v167_v1  ;;  %v170_v5 = vld [vmem:[#allocation4 + $0x18] sm:$0xff]  ;;  %v171_v7 = vld [vmem:[#allocation4 + $0x20] sm:$0xff] }
  0x28   :  { %v658_v6 = vpack.c.bf16 %v170_v5, %v169_v3  ;;  %v172_v8 = vld [vmem:[#allocation4 + $0x28] sm:$0xff]  ;;  %v173_v10 = vld [vmem:[#allocation4 + $0x30] sm:$0xff]  ;;  %v174_v11 = vld [vmem:[#allocation4 + $0x38] sm:$0xff] }
  0x29   :  { %656 = vmatpush1.bf16.msra.mxu0 %v655_v4  ;;  %718 = vmatpush1.bf16.msra.mxu1 %v655_v4  ;;  %v661_v9 = vpack.c.bf16 %v172_v8, %v171_v7  ;;  %v40_v12 = vld [vmem:[#allocation2 + $0x8] sm:$0xff]  ;;  %v664_v13 = vpack.c.bf16 %v174_v11, %v173_v10  ;;  %v175_v15 = vld [vmem:[#allocation4 + $0x40] sm:$0xff]  ;;  %v177_v18 = vld [vmem:[#allocation4 + $0x50] sm:$0xff] }
  0x2a   :  { %657 = vmatprep.subr.bf16.mxu0 %v795_v0  ;;  %703 = vmatprep.subr.bf16.mxu1 %v795_v0  ;;  %v104_v14 = vld [vmem:[#allocation2 + $0x208] sm:$0xff]  ;;  %v178_v19 = vld [vmem:[#allocation4 + $0x58] sm:$0xff]  ;;  %v179_v21 = vld [vmem:[#allocation4 + $0x60] sm:$0xff] }
  0x2b   :  { %v176_v16 = vld [vmem:[#allocation4 + $0x48] sm:$0xff]  ;;  %263 = vmatprep.mubr.f32.mxu0 %v40_v12  ;;  %423 = vmatprep.mubr.f32.mxu1 %v104_v14  ;;  %v670_v20 = vpack.c.bf16 %v178_v19, %v177_v18  ;;  %v181_v24 = vld [vmem:[#allocation4 + $0x70] sm:$0xff]  ;;  %v182_v25 = vld [vmem:[#allocation4 + $0x78] sm:$0xff] }
  0x2c   :  { %v667_v17 = vpack.c.bf16 %v176_v16, %v175_v15  ;;  %v180_v22 = vld [vmem:[#allocation4 + $0x68] sm:$0xff]  ;;  %v676_v26 = vpack.c.bf16 %v182_v25, %v181_v24  ;;  %v183_v27 = vld [vmem:[#allocation4 + $0x80] sm:$0xff]  ;;  %v185_v30 = vld [vmem:[#allocation4 + $0x90] sm:$0xff] }
  0x2d   :  { %659 = vmatpush1.bf16.msra.mxu0 %v658_v6  ;;  %719 = vmatpush1.bf16.msra.mxu1 %v658_v6  ;;  %v673_v23 = vpack.c.bf16 %v180_v22, %v179_v21  ;;  %v184_v28 = vld [vmem:[#allocation4 + $0x88] sm:$0xff]  ;;  %v186_v31 = vld [vmem:[#allocation4 + $0x98] sm:$0xff]  ;;  %v187_v33 = vld [vmem:[#allocation4 + $0xa0] sm:$0xff] }
  0x2e   :  { %660 = vmatprep.subr.bf16.mxu0 %v795_v0  ;;  %704 = vmatprep.subr.bf16.mxu1 %v795_v0  ;;  %v679_v29 = vpack.c.bf16 %v184_v28, %v183_v27  ;;  %v682_v32 = vpack.c.bf16 %v186_v31, %v185_v30  ;;  %v188_v34 = vld [vmem:[#allocation4 + $0xa8] sm:$0xff]  ;;  %v189_v36 = vld [vmem:[#allocation4 + $0xb0] sm:$0xff]  ;;  %v190_v37 = vld [vmem:[#allocation4 + $0xb8] sm:$0xff] }
  0x2f   :  { %v685_v35 = vpack.c.bf16 %v188_v34, %v187_v33  ;;  %v688_v38 = vpack.c.bf16 %v190_v37, %v189_v36  ;;  %v191_v39 = vld [vmem:[#allocation4 + $0xc0] sm:$0xff]  ;;  %v192_v40 = vld [vmem:[#allocation4 + $0xc8] sm:$0xff]  ;;  %v193_v42 = vld [vmem:[#allocation4 + $0xd0] sm:$0xff] }
  0x30   :  { %v691_v41 = vpack.c.bf16 %v192_v40, %v191_v39  ;;  %v194_v43 = vld [vmem:[#allocation4 + $0xd8] sm:$0xff]  ;;  %v195_v45 = vld [vmem:[#allocation4 + $0xe0] sm:$0xff]  ;;  %v196_v46 = vld [vmem:[#allocation4 + $0xe8] sm:$0xff] }
  0x31   :  { %662 = vmatpush1.bf16.msra.mxu0 %v661_v9  ;;  %720 = vmatpush1.bf16.msra.mxu1 %v661_v9  ;;  %v694_v44 = vpack.c.bf16 %v194_v43, %v193_v42  ;;  %v697_v47 = vpack.c.bf16 %v196_v46, %v195_v45  ;;  %v197_v48 = vld [vmem:[#allocation4 + $0xf0] sm:$0xff]  ;;  %v198_v49 = vld [vmem:[#allocation4 + $0xf8] sm:$0xff]  ;;  %v39_v51 = vld [vmem:[#allocation2] sm:$0xff] }
  0x32   :  { %663 = vmatprep.subr.bf16.mxu0 %v795_v0  ;;  %705 = vmatprep.subr.bf16.mxu1 %v795_v0  ;;  %v700_v50 = vpack.c.bf16 %v198_v49, %v197_v48  ;;  %v103_v52 = vld [vmem:[#allocation2 + $0x200] sm:$0xff]  ;;  %v42_v53 = vld [vmem:[#allocation2 + $0x18] sm:$0xff]  ;;  %v41_v55 = vld [vmem:[#allocation2 + $0x10] sm:$0xff] }
  0x33   :  { %v106_v54 = vld [vmem:[#allocation2 + $0x218] sm:$0xff]  ;;  %v105_v56 = vld [vmem:[#allocation2 + $0x210] sm:$0xff]  ;;  %v44_v57 = vld [vmem:[#allocation2 + $0x28] sm:$0xff] }
  0x34   :  { %v108_v58 = vld [vmem:[#allocation2 + $0x228] sm:$0xff]  ;;  %v43_v59 = vld [vmem:[#allocation2 + $0x20] sm:$0xff]  ;;  %v46_v61 = vld [vmem:[#allocation2 + $0x38] sm:$0xff] }
  0x35   :  { %665 = vmatpush1.bf16.msra.mxu0 %v664_v13  ;;  %721 = vmatpush1.bf16.msra.mxu1 %v664_v13  ;;  %v107_v60 = vld [vmem:[#allocation2 + $0x220] sm:$0xff]  ;;  %v110_v62 = vld [vmem:[#allocation2 + $0x238] sm:$0xff]  ;;  %v45_v63 = vld [vmem:[#allocation2 + $0x30] sm:$0xff] }
  0x36   :  { %666 = vmatprep.subr.bf16.mxu0 %v795_v0  ;;  %706 = vmatprep.subr.bf16.mxu1 %v795_v0  ;;  %v48_v1 = vld [vmem:[#allocation2 + $0x48] sm:$0xff]  ;;  %v47_v3 = vld [vmem:[#allocation2 + $0x40] sm:$0xff]  ;;  %v50_v5 = vld [vmem:[#allocation2 + $0x58] sm:$0xff] }
  0x37   :  { %v112_v2 = vld [vmem:[#allocation2 + $0x248] sm:$0xff]  ;;  %v111_v4 = vld [vmem:[#allocation2 + $0x240] sm:$0xff]  ;;  %v114_v6 = vld [vmem:[#allocation2 + $0x258] sm:$0xff] }
  0x38   :  { %v49_v7 = vld [vmem:[#allocation2 + $0x50] sm:$0xff]  ;;  %v52_v9 = vld [vmem:[#allocation2 + $0x68] sm:$0xff]  ;;  %v51_v11 = vld [vmem:[#allocation2 + $0x60] sm:$0xff] }
  0x39   :  { %668 = vmatpush1.bf16.msra.mxu0 %v667_v17  ;;  %722 = vmatpush1.bf16.msra.mxu1 %v667_v17  ;;  %v113_v8 = vld [vmem:[#allocation2 + $0x250] sm:$0xff]  ;;  %v116_v10 = vld [vmem:[#allocation2 + $0x268] sm:$0xff]  ;;  %v115_v12 = vld [vmem:[#allocation2 + $0x260] sm:$0xff] }
  0x3a   :  { %669 = vmatprep.subr.bf16.mxu0 %v795_v0  ;;  %707 = vmatprep.subr.bf16.mxu1 %v795_v0  ;;  %v54_v13 = vld [vmem:[#allocation2 + $0x78] sm:$0xff]  ;;  %v53_v15 = vld [vmem:[#allocation2 + $0x70] sm:$0xff]  ;;  %v56_v17 = vld [vmem:[#allocation2 + $0x88] sm:$0xff] }
  0x3b   :  { %v118_v14 = vld [vmem:[#allocation2 + $0x278] sm:$0xff]  ;;  %v117_v16 = vld [vmem:[#allocation2 + $0x270] sm:$0xff]  ;;  %v120_v18 = vld [vmem:[#allocation2 + $0x288] sm:$0xff] }
  0x3c   :  { %v55_v19 = vld [vmem:[#allocation2 + $0x80] sm:$0xff]  ;;  %v58_v21 = vld [vmem:[#allocation2 + $0x98] sm:$0xff]  ;;  %v121_v24 = vld [vmem:[#allocation2 + $0x290] sm:$0xff] }
  0x3d   :  { %671 = vmatpush1.bf16.msra.mxu0 %v670_v20  ;;  %723 = vmatpush1.bf16.msra.mxu1 %v670_v20  ;;  %v119_v20 = vld [vmem:[#allocation2 + $0x280] sm:$0xff]  ;;  %v122_v22 = vld [vmem:[#allocation2 + $0x298] sm:$0xff]  ;;  %v60_v25 = vld [vmem:[#allocation2 + $0xa8] sm:$0xff] }
  0x3e   :  { %672 = vmatprep.subr.bf16.mxu0 %v795_v0  ;;  %708 = vmatprep.subr.bf16.mxu1 %v795_v0  ;;  %v59_v27 = vld [vmem:[#allocation2 + $0xa0] sm:$0xff]  ;;  %v126_v30 = vld [vmem:[#allocation2 + $0x2b8] sm:$0xff]  ;;  %v61_v31 = vld [vmem:[#allocation2 + $0xb0] sm:$0xff] }
  0x3f   :  { %v123_v28 = vld [vmem:[#allocation2 + $0x2a0] sm:$0xff]  ;;  %v64_v33 = vld [vmem:[#allocation2 + $0xc8] sm:$0xff]  ;;  %v66_v37 = vld [vmem:[#allocation2 + $0xd8] sm:$0xff] }
  0x40   :  { %v128_v34 = vld [vmem:[#allocation2 + $0x2c8] sm:$0xff]  ;;  %v127_v36 = vld [vmem:[#allocation2 + $0x2c0] sm:$0xff]  ;;  %v65_v39 = vld [vmem:[#allocation2 + $0xd0] sm:$0xff] }
  0x41   :  { %674 = vmatpush1.bf16.msra.mxu0 %v673_v23  ;;  %724 = vmatpush1.bf16.msra.mxu1 %v673_v23  ;;  %v57_v23 = vld [vmem:[#allocation2 + $0x90] sm:$0xff]  ;;  %v132_v42 = vld [vmem:[#allocation2 + $0x2e8] sm:$0xff]  ;;  %v67_v43 = vld [vmem:[#allocation2 + $0xe0] sm:$0xff] }
  0x42   :  { %675 = vmatprep.subr.bf16.mxu0 %v795_v0  ;;  %709 = vmatprep.subr.bf16.mxu1 %v795_v0  ;;  %v129_v40 = vld [vmem:[#allocation2 + $0x2d0] sm:$0xff]  ;;  %v70_v45 = vld [vmem:[#allocation2 + $0xf8] sm:$0xff]  ;;  %v72_v49 = vld [vmem:[#allocation2 + $0x108] sm:$0xff] }
  0x43   :  { %v134_v46 = vld [vmem:[#allocation2 + $0x2f8] sm:$0xff]  ;;  %v133_v48 = vld [vmem:[#allocation2 + $0x2f0] sm:$0xff] }
  0x45   :  { %677 = vmatpush1.bf16.msra.mxu0 %v676_v26  ;;  %725 = vmatpush1.bf16.msra.mxu1 %v676_v26  ;;  %v124_v26 = vld [vmem:[#allocation2 + $0x2a8] sm:$0xff] }
  0x46   :  { %678 = vmatprep.subr.bf16.mxu0 %v795_v0  ;;  %710 = vmatprep.subr.bf16.mxu1 %v795_v0 }
  0x49   :  { %680 = vmatpush1.bf16.msra.mxu0 %v679_v29  ;;  %726 = vmatpush1.bf16.msra.mxu1 %v679_v29  ;;  %v62_v29 = vld [vmem:[#allocation2 + $0xb8] sm:$0xff] }
  0x4a   :  { %681 = vmatprep.subr.bf16.mxu0 %v795_v0  ;;  %711 = vmatprep.subr.bf16.mxu1 %v795_v0 }
  0x4d   :  { %683 = vmatpush1.bf16.msra.mxu0 %v682_v32  ;;  %727 = vmatpush1.bf16.msra.mxu1 %v682_v32  ;;  %v125_v32 = vld [vmem:[#allocation2 + $0x2b0] sm:$0xff] }
  0x4e   :  { %684 = vmatprep.subr.bf16.mxu0 %v795_v0  ;;  %712 = vmatprep.subr.bf16.mxu1 %v795_v0 }
  0x51   :  { %686 = vmatpush1.bf16.msra.mxu0 %v685_v35  ;;  %728 = vmatpush1.bf16.msra.mxu1 %v685_v35  ;;  %v63_v35 = vld [vmem:[#allocation2 + $0xc0] sm:$0xff] }
  0x52   :  { %687 = vmatprep.subr.bf16.mxu0 %v795_v0  ;;  %713 = vmatprep.subr.bf16.mxu1 %v795_v0 }
  0x55   :  { %689 = vmatpush1.bf16.msra.mxu0 %v688_v38  ;;  %729 = vmatpush1.bf16.msra.mxu1 %v688_v38  ;;  %v130_v38 = vld [vmem:[#allocation2 + $0x2d8] sm:$0xff] }
  0x56   :  { %690 = vmatprep.subr.bf16.mxu0 %v795_v0  ;;  %714 = vmatprep.subr.bf16.mxu1 %v795_v0 }
  0x59   :  { %692 = vmatpush1.bf16.msra.mxu0 %v691_v41  ;;  %730 = vmatpush1.bf16.msra.mxu1 %v691_v41  ;;  %v68_v41 = vld [vmem:[#allocation2 + $0xe8] sm:$0xff] }
  0x5a   :  { %693 = vmatprep.subr.bf16.mxu0 %v795_v0  ;;  %715 = vmatprep.subr.bf16.mxu1 %v795_v0 }
  0x5d   :  { %695 = vmatpush1.bf16.msra.mxu0 %v694_v44  ;;  %731 = vmatpush1.bf16.msra.mxu1 %v694_v44  ;;  %v131_v44 = vld [vmem:[#allocation2 + $0x2e0] sm:$0xff] }
  0x5e   :  { %696 = vmatprep.subr.bf16.mxu0 %v795_v0  ;;  %716 = vmatprep.subr.bf16.mxu1 %v795_v0 }
  0x61   :  { %698 = vmatpush1.bf16.msra.mxu0 %v697_v47  ;;  %732 = vmatpush1.bf16.msra.mxu1 %v697_v47  ;;  %v69_v47 = vld [vmem:[#allocation2 + $0xf0] sm:$0xff] }
  0x62   :  { %699 = vmatprep.subr.bf16.mxu0 %v795_v0  ;;  %717 = vmatprep.subr.bf16.mxu1 %v795_v0  ;;  %v109_v0 = vld [vmem:[#allocation2 + $0x230] sm:$0xff] }
  0x65   :  { %701 = vmatpush1.bf16.msra.mxu0 %v700_v50  ;;  %733 = vmatpush1.bf16.msra.mxu1 %v700_v50  ;;  %v136_v50 = vld [vmem:[#allocation2 + $0x308] sm:$0xff] }
  0x68   :  { %264 = vmatmul.mubr.f32.vlgmr.msra.gmra.mrb[0].mxu0 %v39_v51  ;;  %424 = vmatmul.mubr.f32.vlgmr.msra.gmra.mrb[0].mxu1 %v103_v52  ;;  %v71_v51 = vld [vmem:[#allocation2 + $0x100] sm:$0xff] }
  0x69   :  { %268 = vmatprep.mubr.f32.mxu0 %v42_v53  ;;  %428 = vmatprep.mubr.f32.mxu1 %v106_v54  ;;  %v135_v52 = vld [vmem:[#allocation2 + $0x300] sm:$0xff]  ;;  %v74_v53 = vld [vmem:[#allocation2 + $0x118] sm:$0xff] }
  0x6a   :  { %v138_v54 = vld [vmem:[#allocation2 + $0x318] sm:$0xff] }
  0x6c   :  { %269 = vmatmul.mubr.f32.gmra.mrb[2].mxu0 %v41_v55  ;;  %429 = vmatmul.mubr.f32.gmra.mrb[2].mxu1 %v105_v56  ;;  %v73_v55 = vld [vmem:[#allocation2 + $0x110] sm:$0xff] }
  0x6d   :  { %273 = vmatprep.mubr.f32.mxu0 %v44_v57  ;;  %433 = vmatprep.mubr.f32.mxu1 %v108_v58  ;;  %v137_v56 = vld [vmem:[#allocation2 + $0x310] sm:$0xff]  ;;  %v76_v57 = vld [vmem:[#allocation2 + $0x128] sm:$0xff] }
  0x6e   :  { %v140_v58 = vld [vmem:[#allocation2 + $0x328] sm:$0xff] }
  0x70   :  { %274 = vmatmul.mubr.f32.gmra.mrb[4].mxu0 %v43_v59  ;;  %434 = vmatmul.mubr.f32.gmra.mrb[4].mxu1 %v107_v60  ;;  %v75_v59 = vld [vmem:[#allocation2 + $0x120] sm:$0xff] }
  0x71   :  { %278 = vmatprep.mubr.f32.mxu0 %v46_v61  ;;  %438 = vmatprep.mubr.f32.mxu1 %v110_v62  ;;  %v139_v60 = vld [vmem:[#allocation2 + $0x320] sm:$0xff]  ;;  %v78_v61 = vld [vmem:[#allocation2 + $0x138] sm:$0xff] }
  0x72   :  { %v142_v62 = vld [vmem:[#allocation2 + $0x338] sm:$0xff] }
  0x74   :  { %279 = vmatmul.mubr.f32.gmra.mrb[6].mxu0 %v45_v63  ;;  %439 = vmatmul.mubr.f32.gmra.mrb[6].mxu1 %v109_v0  ;;  %v77_v63 = vld [vmem:[#allocation2 + $0x130] sm:$0xff] }
  0x75   :  { %283 = vmatprep.mubr.f32.mxu0 %v48_v1  ;;  %443 = vmatprep.mubr.f32.mxu1 %v112_v2  ;;  %v141_v0 = vld [vmem:[#allocation2 + $0x330] sm:$0xff]  ;;  %v80_v1 = vld [vmem:[#allocation2 + $0x148] sm:$0xff] }
  0x76   :  { %v144_v2 = vld [vmem:[#allocation2 + $0x348] sm:$0xff] }
  0x78   :  { %284 = vmatmul.mubr.f32.gmra.mrb[8].mxu0 %v47_v3  ;;  %444 = vmatmul.mubr.f32.gmra.mrb[8].mxu1 %v111_v4  ;;  %v79_v3 = vld [vmem:[#allocation2 + $0x140] sm:$0xff] }
  0x79   :  { %288 = vmatprep.mubr.f32.mxu0 %v50_v5  ;;  %448 = vmatprep.mubr.f32.mxu1 %v114_v6  ;;  %v143_v4 = vld [vmem:[#allocation2 + $0x340] sm:$0xff]  ;;  %v82_v5 = vld [vmem:[#allocation2 + $0x158] sm:$0xff] }
  0x7a   :  { %v146_v6 = vld [vmem:[#allocation2 + $0x358] sm:$0xff] }
  0x7c   :  { %289 = vmatmul.mubr.f32.gmra.mrb[10].mxu0 %v49_v7  ;;  %449 = vmatmul.mubr.f32.gmra.mrb[10].mxu1 %v113_v8  ;;  %v81_v7 = vld [vmem:[#allocation2 + $0x150] sm:$0xff] }
  0x7d   :  { %293 = vmatprep.mubr.f32.mxu0 %v52_v9  ;;  %453 = vmatprep.mubr.f32.mxu1 %v116_v10  ;;  %v145_v8 = vld [vmem:[#allocation2 + $0x350] sm:$0xff]  ;;  %v84_v9 = vld [vmem:[#allocation2 + $0x168] sm:$0xff] }
  0x7e   :  { %v148_v10 = vld [vmem:[#allocation2 + $0x368] sm:$0xff] }
  0x80   :  { %294 = vmatmul.mubr.f32.gmra.mrb[12].mxu0 %v51_v11  ;;  %454 = vmatmul.mubr.f32.gmra.mrb[12].mxu1 %v115_v12  ;;  %v83_v11 = vld [vmem:[#allocation2 + $0x160] sm:$0xff] }
  0x81   :  { %298 = vmatprep.mubr.f32.mxu0 %v54_v13  ;;  %458 = vmatprep.mubr.f32.mxu1 %v118_v14  ;;  %v147_v12 = vld [vmem:[#allocation2 + $0x360] sm:$0xff]  ;;  %v86_v13 = vld [vmem:[#allocation2 + $0x178] sm:$0xff] }
  0x82   :  { %v150_v14 = vld [vmem:[#allocation2 + $0x378] sm:$0xff] }
  0x84   :  { %299 = vmatmul.mubr.f32.gmra.mrb[14].mxu0 %v53_v15  ;;  %459 = vmatmul.mubr.f32.gmra.mrb[14].mxu1 %v117_v16  ;;  %v85_v15 = vld [vmem:[#allocation2 + $0x170] sm:$0xff] }
  0x85   :  { %303 = vmatprep.mubr.f32.mxu0 %v56_v17  ;;  %463 = vmatprep.mubr.f32.mxu1 %v120_v18  ;;  %v149_v16 = vld [vmem:[#allocation2 + $0x370] sm:$0xff]  ;;  %v88_v17 = vld [vmem:[#allocation2 + $0x188] sm:$0xff] }
  0x86   :  { %v152_v18 = vld [vmem:[#allocation2 + $0x388] sm:$0xff] }
  0x88   :  { %304 = vmatmul.mubr.f32.gmra.mrb[16].mxu0 %v55_v19  ;;  %464 = vmatmul.mubr.f32.gmra.mrb[16].mxu1 %v119_v20  ;;  %v87_v19 = vld [vmem:[#allocation2 + $0x180] sm:$0xff] }
  0x89   :  { %308 = vmatprep.mubr.f32.mxu0 %v58_v21  ;;  %468 = vmatprep.mubr.f32.mxu1 %v122_v22  ;;  %v151_v20 = vld [vmem:[#allocation2 + $0x380] sm:$0xff]  ;;  %v90_v21 = vld [vmem:[#allocation2 + $0x198] sm:$0xff] }
  0x8a   :  { %v154_v22 = vld [vmem:[#allocation2 + $0x398] sm:$0xff] }
  0x8c   :  { %309 = vmatmul.mubr.f32.gmra.mrb[18].mxu0 %v57_v23  ;;  %469 = vmatmul.mubr.f32.gmra.mrb[18].mxu1 %v121_v24  ;;  %v89_v23 = vld [vmem:[#allocation2 + $0x190] sm:$0xff] }
  0x8d   :  { %313 = vmatprep.mubr.f32.mxu0 %v60_v25  ;;  %473 = vmatprep.mubr.f32.mxu1 %v124_v26  ;;  %v153_v24 = vld [vmem:[#allocation2 + $0x390] sm:$0xff]  ;;  %v92_v25 = vld [vmem:[#allocation2 + $0x1a8] sm:$0xff] }
  0x8e   :  { %v156_v26 = vld [vmem:[#allocation2 + $0x3a8] sm:$0xff] }
  0x90   :  { %314 = vmatmul.mubr.f32.gmra.mrb[20].mxu0 %v59_v27  ;;  %474 = vmatmul.mubr.f32.gmra.mrb[20].mxu1 %v123_v28  ;;  %v91_v27 = vld [vmem:[#allocation2 + $0x1a0] sm:$0xff] }
  0x91   :  { %318 = vmatprep.mubr.f32.mxu0 %v62_v29  ;;  %478 = vmatprep.mubr.f32.mxu1 %v126_v30  ;;  %v155_v28 = vld [vmem:[#allocation2 + $0x3a0] sm:$0xff]  ;;  %v94_v29 = vld [vmem:[#allocation2 + $0x1b8] sm:$0xff] }
  0x92   :  { %v158_v30 = vld [vmem:[#allocation2 + $0x3b8] sm:$0xff] }
  0x94   :  { %319 = vmatmul.mubr.f32.gmra.mrb[22].mxu0 %v61_v31  ;;  %479 = vmatmul.mubr.f32.gmra.mrb[22].mxu1 %v125_v32  ;;  %v93_v31 = vld [vmem:[#allocation2 + $0x1b0] sm:$0xff] }
  0x95   :  { %323 = vmatprep.mubr.f32.mxu0 %v64_v33  ;;  %483 = vmatprep.mubr.f32.mxu1 %v128_v34  ;;  %v157_v32 = vld [vmem:[#allocation2 + $0x3b0] sm:$0xff]  ;;  %v96_v33 = vld [vmem:[#allocation2 + $0x1c8] sm:$0xff] }
  0x96   :  { %v160_v34 = vld [vmem:[#allocation2 + $0x3c8] sm:$0xff] }
  0x98   :  { %324 = vmatmul.mubr.f32.gmra.mrb[24].mxu0 %v63_v35  ;;  %484 = vmatmul.mubr.f32.gmra.mrb[24].mxu1 %v127_v36  ;;  %v95_v35 = vld [vmem:[#allocation2 + $0x1c0] sm:$0xff] }
  0x99   :  { %328 = vmatprep.mubr.f32.mxu0 %v66_v37  ;;  %488 = vmatprep.mubr.f32.mxu1 %v130_v38  ;;  %v159_v36 = vld [vmem:[#allocation2 + $0x3c0] sm:$0xff]  ;;  %v98_v37 = vld [vmem:[#allocation2 + $0x1d8] sm:$0xff] }
  0x9a   :  { %v162_v38 = vld [vmem:[#allocation2 + $0x3d8] sm:$0xff] }
  0x9c   :  { %329 = vmatmul.mubr.f32.gmra.mrb[26].mxu0 %v65_v39  ;;  %489 = vmatmul.mubr.f32.gmra.mrb[26].mxu1 %v129_v40  ;;  %v97_v39 = vld [vmem:[#allocation2 + $0x1d0] sm:$0xff] }
  0x9d   :  { %333 = vmatprep.mubr.f32.mxu0 %v68_v41  ;;  %493 = vmatprep.mubr.f32.mxu1 %v132_v42  ;;  %v161_v40 = vld [vmem:[#allocation2 + $0x3d0] sm:$0xff]  ;;  %v100_v41 = vld [vmem:[#allocation2 + $0x1e8] sm:$0xff] }
  0x9e   :  { %v164_v42 = vld [vmem:[#allocation2 + $0x3e8] sm:$0xff] }
  0xa0   :  { %334 = vmatmul.mubr.f32.gmra.mrb[28].mxu0 %v67_v43  ;;  %494 = vmatmul.mubr.f32.gmra.mrb[28].mxu1 %v131_v44  ;;  %v99_v43 = vld [vmem:[#allocation2 + $0x1e0] sm:$0xff] }
  0xa1   :  { %338 = vmatprep.mubr.f32.mxu0 %v70_v45  ;;  %498 = vmatprep.mubr.f32.mxu1 %v134_v46  ;;  %v163_v44 = vld [vmem:[#allocation2 + $0x3e0] sm:$0xff]  ;;  %v102_v45 = vld [vmem:[#allocation2 + $0x1f8] sm:$0xff] }
  0xa2   :  { %v166_v46 = vld [vmem:[#allocation2 + $0x3f8] sm:$0xff] }
  0xa4   :  { %339 = vmatmul.mubr.f32.gmra.mrb[30].mxu0 %v69_v47  ;;  %499 = vmatmul.mubr.f32.gmra.mrb[30].mxu1 %v133_v48  ;;  %v101_v47 = vld [vmem:[#allocation2 + $0x1f0] sm:$0xff] }
  0xa5   :  { %343 = vmatprep.mubr.f32.mxu0 %v72_v49  ;;  %503 = vmatprep.mubr.f32.mxu1 %v136_v50  ;;  %v165_v48 = vld [vmem:[#allocation2 + $0x3f0] sm:$0xff] }
  0xa8   :  { %344 = vmatmul.mubr.f32.gmra.mrb[32].mxu0 %v71_v51  ;;  %504 = vmatmul.mubr.f32.gmra.mrb[32].mxu1 %v135_v52 }
  0xa9   :  { %348 = vmatprep.mubr.f32.mxu0 %v74_v53  ;;  %508 = vmatprep.mubr.f32.mxu1 %v138_v54 }
  0xac   :  { %349 = vmatmul.mubr.f32.gmra.mrb[34].mxu0 %v73_v55  ;;  %509 = vmatmul.mubr.f32.gmra.mrb[34].mxu1 %v137_v56 }
  0xad   :  { %353 = vmatprep.mubr.f32.mxu0 %v76_v57  ;;  %513 = vmatprep.mubr.f32.mxu1 %v140_v58 }
  0xb0   :  { %354 = vmatmul.mubr.f32.gmra.mrb[36].mxu0 %v75_v59  ;;  %514 = vmatmul.mubr.f32.gmra.mrb[36].mxu1 %v139_v60 }
  0xb1   :  { %358 = vmatprep.mubr.f32.mxu0 %v78_v61  ;;  %518 = vmatprep.mubr.f32.mxu1 %v142_v62 }
  0xb4   :  { %359 = vmatmul.mubr.f32.gmra.mrb[38].mxu0 %v77_v63  ;;  %519 = vmatmul.mubr.f32.gmra.mrb[38].mxu1 %v141_v0 }
  0xb5   :  { %363 = vmatprep.mubr.f32.mxu0 %v80_v1  ;;  %523 = vmatprep.mubr.f32.mxu1 %v144_v2 }
  0xb8   :  { %364 = vmatmul.mubr.f32.gmra.mrb[40].mxu0 %v79_v3  ;;  %524 = vmatmul.mubr.f32.gmra.mrb[40].mxu1 %v143_v4 }
  0xb9   :  { %368 = vmatprep.mubr.f32.mxu0 %v82_v5  ;;  %528 = vmatprep.mubr.f32.mxu1 %v146_v6 }
  0xbc   :  { %369 = vmatmul.mubr.f32.gmra.mrb[42].mxu0 %v81_v7  ;;  %529 = vmatmul.mubr.f32.gmra.mrb[42].mxu1 %v145_v8 }
  0xbd   :  { %373 = vmatprep.mubr.f32.mxu0 %v84_v9  ;;  %533 = vmatprep.mubr.f32.mxu1 %v148_v10 }
  0xc0   :  { %374 = vmatmul.mubr.f32.gmra.mrb[44].mxu0 %v83_v11  ;;  %534 = vmatmul.mubr.f32.gmra.mrb[44].mxu1 %v147_v12 }
  0xc1   :  { %378 = vmatprep.mubr.f32.mxu0 %v86_v13  ;;  %538 = vmatprep.mubr.f32.mxu1 %v150_v14 }
  0xc4   :  { %379 = vmatmul.mubr.f32.gmra.mrb[46].mxu0 %v85_v15  ;;  %539 = vmatmul.mubr.f32.gmra.mrb[46].mxu1 %v149_v16 }
  0xc5   :  { %383 = vmatprep.mubr.f32.mxu0 %v88_v17  ;;  %543 = vmatprep.mubr.f32.mxu1 %v152_v18 }
  0xc8   :  { %384 = vmatmul.mubr.f32.gmra.mrb[48].mxu0 %v87_v19  ;;  %544 = vmatmul.mubr.f32.gmra.mrb[48].mxu1 %v151_v20 }
  0xc9   :  { %388 = vmatprep.mubr.f32.mxu0 %v90_v21  ;;  %548 = vmatprep.mubr.f32.mxu1 %v154_v22 }
  0xcc   :  { %389 = vmatmul.mubr.f32.gmra.mrb[50].mxu0 %v89_v23  ;;  %549 = vmatmul.mubr.f32.gmra.mrb[50].mxu1 %v153_v24 }
  0xcd   :  { %393 = vmatprep.mubr.f32.mxu0 %v92_v25  ;;  %553 = vmatprep.mubr.f32.mxu1 %v156_v26 }
  0xd0   :  { %394 = vmatmul.mubr.f32.gmra.mrb[52].mxu0 %v91_v27  ;;  %554 = vmatmul.mubr.f32.gmra.mrb[52].mxu1 %v155_v28 }
  0xd1   :  { %398 = vmatprep.mubr.f32.mxu0 %v94_v29  ;;  %558 = vmatprep.mubr.f32.mxu1 %v158_v30 }
  0xd4   :  { %399 = vmatmul.mubr.f32.gmra.mrb[54].mxu0 %v93_v31  ;;  %559 = vmatmul.mubr.f32.gmra.mrb[54].mxu1 %v157_v32 }
  0xd5   :  { %403 = vmatprep.mubr.f32.mxu0 %v96_v33  ;;  %563 = vmatprep.mubr.f32.mxu1 %v160_v34 }
  0xd8   :  { %404 = vmatmul.mubr.f32.gmra.mrb[56].mxu0 %v95_v35  ;;  %564 = vmatmul.mubr.f32.gmra.mrb[56].mxu1 %v159_v36 }
  0xd9   :  { %408 = vmatprep.mubr.f32.mxu0 %v98_v37  ;;  %568 = vmatprep.mubr.f32.mxu1 %v162_v38 }
  0xdc   :  { %409 = vmatmul.mubr.f32.gmra.mrb[58].mxu0 %v97_v39  ;;  %569 = vmatmul.mubr.f32.gmra.mrb[58].mxu1 %v161_v40 }
  0xdd   :  { %413 = vmatprep.mubr.f32.mxu0 %v100_v41  ;;  %573 = vmatprep.mubr.f32.mxu1 %v164_v42 }
  0xe0   :  { %414 = vmatmul.mubr.f32.gmra.mrb[60].mxu0 %v99_v43  ;;  %574 = vmatmul.mubr.f32.gmra.mrb[60].mxu1 %v163_v44 }
  0xe1   :  { %418 = vmatprep.mubr.f32.mxu0 %v102_v45  ;;  %578 = vmatprep.mubr.f32.mxu1 %v166_v46 }
  0xe4   :  { %419 = vmatmul.mubr.f32.gmra.mrb[62].mxu0 %v101_v47  ;;  %579 = vmatmul.mubr.f32.gmra.mrb[62].mxu1 %v165_v48 }
 0x13b   :  { %v265_v49 = vpop.f32.mrb[0].mxu0  ;;  %v425_v50 = vpop.f32.mrb[0].mxu1 }
 0x13c   :  { %584 = vst [vmem:[%s1061_s2] sm:$0xff] %v265_v49  ;;  %616 = vst [vmem:[%s1061_s2 + $0x100] sm:$0xff] %v425_v50  ;;  %v267_v51 = vpop.f32.mrb[1].mxu0  ;;  %v427_v52 = vpop.f32.mrb[1].mxu1 }
 0x13f   :  { %v270_v53 = vpop.f32.mrb[2].mxu0  ;;  %v430_v54 = vpop.f32.mrb[2].mxu1 }
 0x140   :  { %585 = vst [vmem:[%s1061_s2 + $0x8] sm:$0xff] %v270_v53  ;;  %617 = vst [vmem:[%s1061_s2 + $0x108] sm:$0xff] %v430_v54  ;;  %v272_v55 = vpop.f32.mrb[3].mxu0  ;;  %v432_v56 = vpop.f32.mrb[3].mxu1 }
 0x143   :  { %v275_v57 = vpop.f32.mrb[4].mxu0  ;;  %v435_v58 = vpop.f32.mrb[4].mxu1 }
 0x144   :  { %586 = vst [vmem:[%s1061_s2 + $0x10] sm:$0xff] %v275_v57  ;;  %618 = vst [vmem:[%s1061_s2 + $0x110] sm:$0xff] %v435_v58  ;;  %v277_v59 = vpop.f32.mrb[5].mxu0  ;;  %v437_v60 = vpop.f32.mrb[5].mxu1 }
 0x147   :  { %v280_v61 = vpop.f32.mrb[6].mxu0  ;;  %v440_v62 = vpop.f32.mrb[6].mxu1 }
 0x148   :  { %587 = vst [vmem:[%s1061_s2 + $0x18] sm:$0xff] %v280_v61  ;;  %619 = vst [vmem:[%s1061_s2 + $0x118] sm:$0xff] %v440_v62  ;;  %v282_v63 = vpop.f32.mrb[7].mxu0  ;;  %v442_v0 = vpop.f32.mrb[7].mxu1 }
 0x14b   :  { %v285_v1 = vpop.f32.mrb[8].mxu0  ;;  %v445_v2 = vpop.f32.mrb[8].mxu1 }
 0x14c   :  { %588 = vst [vmem:[%s1061_s2 + $0x20] sm:$0xff] %v285_v1  ;;  %620 = vst [vmem:[%s1061_s2 + $0x120] sm:$0xff] %v445_v2  ;;  %v287_v3 = vpop.f32.mrb[9].mxu0  ;;  %v447_v4 = vpop.f32.mrb[9].mxu1 }
 0x14f   :  { %v290_v5 = vpop.f32.mrb[10].mxu0  ;;  %v450_v6 = vpop.f32.mrb[10].mxu1 }
 0x150   :  { %589 = vst [vmem:[%s1061_s2 + $0x28] sm:$0xff] %v290_v5  ;;  %621 = vst [vmem:[%s1061_s2 + $0x128] sm:$0xff] %v450_v6  ;;  %v292_v7 = vpop.f32.mrb[11].mxu0  ;;  %v452_v8 = vpop.f32.mrb[11].mxu1 }
 0x153   :  { %v295_v9 = vpop.f32.mrb[12].mxu0  ;;  %v455_v10 = vpop.f32.mrb[12].mxu1 }
 0x154   :  { %590 = vst [vmem:[%s1061_s2 + $0x30] sm:$0xff] %v295_v9  ;;  %622 = vst [vmem:[%s1061_s2 + $0x130] sm:$0xff] %v455_v10  ;;  %v297_v11 = vpop.f32.mrb[13].mxu0  ;;  %v457_v12 = vpop.f32.mrb[13].mxu1 }
 0x157   :  { %v300_v13 = vpop.f32.mrb[14].mxu0  ;;  %v460_v14 = vpop.f32.mrb[14].mxu1 }
 0x158   :  { %591 = vst [vmem:[%s1061_s2 + $0x38] sm:$0xff] %v300_v13  ;;  %623 = vst [vmem:[%s1061_s2 + $0x138] sm:$0xff] %v460_v14  ;;  %v302_v15 = vpop.f32.mrb[15].mxu0  ;;  %v462_v16 = vpop.f32.mrb[15].mxu1 }
 0x15b   :  { %v305_v17 = vpop.f32.mrb[16].mxu0  ;;  %v465_v18 = vpop.f32.mrb[16].mxu1 }
 0x15c   :  { %592 = vst [vmem:[%s1061_s2 + $0x40] sm:$0xff] %v305_v17  ;;  %624 = vst [vmem:[%s1061_s2 + $0x140] sm:$0xff] %v465_v18  ;;  %v307_v19 = vpop.f32.mrb[17].mxu0  ;;  %v467_v20 = vpop.f32.mrb[17].mxu1 }
 0x15f   :  { %v310_v21 = vpop.f32.mrb[18].mxu0  ;;  %v470_v22 = vpop.f32.mrb[18].mxu1 }
 0x160   :  { %593 = vst [vmem:[%s1061_s2 + $0x48] sm:$0xff] %v310_v21  ;;  %625 = vst [vmem:[%s1061_s2 + $0x148] sm:$0xff] %v470_v22  ;;  %v312_v23 = vpop.f32.mrb[19].mxu0  ;;  %v472_v24 = vpop.f32.mrb[19].mxu1 }
 0x163   :  { %v315_v25 = vpop.f32.mrb[20].mxu0  ;;  %v475_v26 = vpop.f32.mrb[20].mxu1 }
 0x164   :  { %594 = vst [vmem:[%s1061_s2 + $0x50] sm:$0xff] %v315_v25  ;;  %626 = vst [vmem:[%s1061_s2 + $0x150] sm:$0xff] %v475_v26  ;;  %v317_v27 = vpop.f32.mrb[21].mxu0  ;;  %v477_v28 = vpop.f32.mrb[21].mxu1 }
 0x167   :  { %v320_v29 = vpop.f32.mrb[22].mxu0  ;;  %v480_v30 = vpop.f32.mrb[22].mxu1 }
 0x168   :  { %595 = vst [vmem:[%s1061_s2 + $0x58] sm:$0xff] %v320_v29  ;;  %627 = vst [vmem:[%s1061_s2 + $0x158] sm:$0xff] %v480_v30  ;;  %v322_v31 = vpop.f32.mrb[23].mxu0  ;;  %v482_v32 = vpop.f32.mrb[23].mxu1 }
 0x16b   :  { %v325_v33 = vpop.f32.mrb[24].mxu0  ;;  %v485_v34 = vpop.f32.mrb[24].mxu1 }
 0x16c   :  { %596 = vst [vmem:[%s1061_s2 + $0x60] sm:$0xff] %v325_v33  ;;  %628 = vst [vmem:[%s1061_s2 + $0x160] sm:$0xff] %v485_v34  ;;  %v327_v35 = vpop.f32.mrb[25].mxu0  ;;  %v487_v36 = vpop.f32.mrb[25].mxu1 }
 0x16f   :  { %v330_v37 = vpop.f32.mrb[26].mxu0  ;;  %v490_v38 = vpop.f32.mrb[26].mxu1 }
 0x170   :  { %597 = vst [vmem:[%s1061_s2 + $0x68] sm:$0xff] %v330_v37  ;;  %629 = vst [vmem:[%s1061_s2 + $0x168] sm:$0xff] %v490_v38  ;;  %v332_v39 = vpop.f32.mrb[27].mxu0  ;;  %v492_v40 = vpop.f32.mrb[27].mxu1 }
 0x173   :  { %v335_v41 = vpop.f32.mrb[28].mxu0  ;;  %v495_v42 = vpop.f32.mrb[28].mxu1 }
 0x174   :  { %598 = vst [vmem:[%s1061_s2 + $0x70] sm:$0xff] %v335_v41  ;;  %630 = vst [vmem:[%s1061_s2 + $0x170] sm:$0xff] %v495_v42  ;;  %v337_v43 = vpop.f32.mrb[29].mxu0  ;;  %v497_v44 = vpop.f32.mrb[29].mxu1 }
 0x177   :  { %v340_v45 = vpop.f32.mrb[30].mxu0  ;;  %v500_v46 = vpop.f32.mrb[30].mxu1 }
 0x178   :  { %599 = vst [vmem:[%s1061_s2 + $0x78] sm:$0xff] %v340_v45  ;;  %631 = vst [vmem:[%s1061_s2 + $0x178] sm:$0xff] %v500_v46  ;;  %v342_v47 = vpop.f32.mrb[31].mxu0  ;;  %v502_v48 = vpop.f32.mrb[31].mxu1 }
 0x17b   :  { %v345_v49 = vpop.f32.mrb[32].mxu0  ;;  %v505_v50 = vpop.f32.mrb[32].mxu1 }
 0x17c   :  { %600 = vst [vmem:[%s1061_s2 + $0x80] sm:$0xff] %v345_v49  ;;  %632 = vst [vmem:[%s1061_s2 + $0x180] sm:$0xff] %v505_v50  ;;  %v347_v51 = vpop.f32.mrb[33].mxu0  ;;  %v507_v52 = vpop.f32.mrb[33].mxu1 }
 0x17f   :  { %v350_v53 = vpop.f32.mrb[34].mxu0  ;;  %v510_v54 = vpop.f32.mrb[34].mxu1 }
 0x180   :  { %601 = vst [vmem:[%s1061_s2 + $0x88] sm:$0xff] %v350_v53  ;;  %633 = vst [vmem:[%s1061_s2 + $0x188] sm:$0xff] %v510_v54  ;;  %v352_v55 = vpop.f32.mrb[35].mxu0  ;;  %v512_v56 = vpop.f32.mrb[35].mxu1 }
 0x183   :  { %v355_v57 = vpop.f32.mrb[36].mxu0  ;;  %v515_v58 = vpop.f32.mrb[36].mxu1 }
 0x184   :  { %602 = vst [vmem:[%s1061_s2 + $0x90] sm:$0xff] %v355_v57  ;;  %634 = vst [vmem:[%s1061_s2 + $0x190] sm:$0xff] %v515_v58  ;;  %v357_v59 = vpop.f32.mrb[37].mxu0  ;;  %v517_v60 = vpop.f32.mrb[37].mxu1 }
 0x187   :  { %v360_v61 = vpop.f32.mrb[38].mxu0  ;;  %v520_v62 = vpop.f32.mrb[38].mxu1 }
 0x188   :  { %603 = vst [vmem:[%s1061_s2 + $0x98] sm:$0xff] %v360_v61  ;;  %635 = vst [vmem:[%s1061_s2 + $0x198] sm:$0xff] %v520_v62  ;;  %v362_v63 = vpop.f32.mrb[39].mxu0  ;;  %v522_v0 = vpop.f32.mrb[39].mxu1 }
 0x18b   :  { %v365_v1 = vpop.f32.mrb[40].mxu0  ;;  %v525_v2 = vpop.f32.mrb[40].mxu1 }
 0x18c   :  { %604 = vst [vmem:[%s1061_s2 + $0xa0] sm:$0xff] %v365_v1  ;;  %636 = vst [vmem:[%s1061_s2 + $0x1a0] sm:$0xff] %v525_v2  ;;  %v367_v3 = vpop.f32.mrb[41].mxu0  ;;  %v527_v4 = vpop.f32.mrb[41].mxu1 }
 0x18f   :  { %v370_v5 = vpop.f32.mrb[42].mxu0  ;;  %v530_v6 = vpop.f32.mrb[42].mxu1 }
 0x190   :  { %605 = vst [vmem:[%s1061_s2 + $0xa8] sm:$0xff] %v370_v5  ;;  %637 = vst [vmem:[%s1061_s2 + $0x1a8] sm:$0xff] %v530_v6  ;;  %v372_v7 = vpop.f32.mrb[43].mxu0  ;;  %v532_v8 = vpop.f32.mrb[43].mxu1 }
 0x193   :  { %v375_v9 = vpop.f32.mrb[44].mxu0  ;;  %v535_v10 = vpop.f32.mrb[44].mxu1 }
 0x194   :  { %606 = vst [vmem:[%s1061_s2 + $0xb0] sm:$0xff] %v375_v9  ;;  %638 = vst [vmem:[%s1061_s2 + $0x1b0] sm:$0xff] %v535_v10  ;;  %v377_v11 = vpop.f32.mrb[45].mxu0  ;;  %v537_v12 = vpop.f32.mrb[45].mxu1 }
 0x197   :  { %v380_v13 = vpop.f32.mrb[46].mxu0  ;;  %v540_v14 = vpop.f32.mrb[46].mxu1 }
 0x198   :  { %607 = vst [vmem:[%s1061_s2 + $0xb8] sm:$0xff] %v380_v13  ;;  %639 = vst [vmem:[%s1061_s2 + $0x1b8] sm:$0xff] %v540_v14  ;;  %v382_v15 = vpop.f32.mrb[47].mxu0  ;;  %v542_v16 = vpop.f32.mrb[47].mxu1 }
 0x19b   :  { %v385_v17 = vpop.f32.mrb[48].mxu0  ;;  %v545_v18 = vpop.f32.mrb[48].mxu1 }
 0x19c   :  { %608 = vst [vmem:[%s1061_s2 + $0xc0] sm:$0xff] %v385_v17  ;;  %640 = vst [vmem:[%s1061_s2 + $0x1c0] sm:$0xff] %v545_v18  ;;  %v387_v19 = vpop.f32.mrb[49].mxu0  ;;  %v547_v20 = vpop.f32.mrb[49].mxu1 }
 0x19f   :  { %v390_v21 = vpop.f32.mrb[50].mxu0  ;;  %v550_v22 = vpop.f32.mrb[50].mxu1 }
 0x1a0   :  { %609 = vst [vmem:[%s1061_s2 + $0xc8] sm:$0xff] %v390_v21  ;;  %641 = vst [vmem:[%s1061_s2 + $0x1c8] sm:$0xff] %v550_v22  ;;  %v392_v23 = vpop.f32.mrb[51].mxu0  ;;  %v552_v24 = vpop.f32.mrb[51].mxu1 }
 0x1a3   :  { %v395_v25 = vpop.f32.mrb[52].mxu0  ;;  %v555_v26 = vpop.f32.mrb[52].mxu1 }
 0x1a4   :  { %610 = vst [vmem:[%s1061_s2 + $0xd0] sm:$0xff] %v395_v25  ;;  %642 = vst [vmem:[%s1061_s2 + $0x1d0] sm:$0xff] %v555_v26  ;;  %v397_v27 = vpop.f32.mrb[53].mxu0  ;;  %v557_v28 = vpop.f32.mrb[53].mxu1 }
 0x1a7   :  { %v400_v29 = vpop.f32.mrb[54].mxu0  ;;  %v560_v30 = vpop.f32.mrb[54].mxu1 }
 0x1a8   :  { %611 = vst [vmem:[%s1061_s2 + $0xd8] sm:$0xff] %v400_v29  ;;  %643 = vst [vmem:[%s1061_s2 + $0x1d8] sm:$0xff] %v560_v30  ;;  %v402_v31 = vpop.f32.mrb[55].mxu0  ;;  %v562_v32 = vpop.f32.mrb[55].mxu1 }
 0x1ab   :  { %v405_v33 = vpop.f32.mrb[56].mxu0  ;;  %v565_v34 = vpop.f32.mrb[56].mxu1 }
 0x1ac   :  { %612 = vst [vmem:[%s1061_s2 + $0xe0] sm:$0xff] %v405_v33  ;;  %644 = vst [vmem:[%s1061_s2 + $0x1e0] sm:$0xff] %v565_v34  ;;  %v407_v35 = vpop.f32.mrb[57].mxu0  ;;  %v567_v36 = vpop.f32.mrb[57].mxu1 }
 0x1af   :  { %v410_v37 = vpop.f32.mrb[58].mxu0  ;;  %v570_v38 = vpop.f32.mrb[58].mxu1 }
 0x1b0   :  { %613 = vst [vmem:[%s1061_s2 + $0xe8] sm:$0xff] %v410_v37  ;;  %645 = vst [vmem:[%s1061_s2 + $0x1e8] sm:$0xff] %v570_v38  ;;  %v412_v39 = vpop.f32.mrb[59].mxu0  ;;  %v572_v40 = vpop.f32.mrb[59].mxu1 }
 0x1b3   :  { %v415_v41 = vpop.f32.mrb[60].mxu0  ;;  %v575_v42 = vpop.f32.mrb[60].mxu1 }
 0x1b4   :  { %614 = vst [vmem:[%s1061_s2 + $0xf0] sm:$0xff] %v415_v41  ;;  %646 = vst [vmem:[%s1061_s2 + $0x1f0] sm:$0xff] %v575_v42  ;;  %v417_v43 = vpop.f32.mrb[61].mxu0  ;;  %v577_v44 = vpop.f32.mrb[61].mxu1 }
 0x1b7   :  { %v420_v45 = vpop.f32.mrb[62].mxu0  ;;  %v580_v46 = vpop.f32.mrb[62].mxu1 }
 0x1b8   :  { %615 = vst [vmem:[%s1061_s2 + $0xf8] sm:$0xff] %v420_v45  ;;  %647 = vst [vmem:[%s1061_s2 + $0x1f8] sm:$0xff] %v580_v46  ;;  %v422_v47 = vpop.f32.mrb[63].mxu0  ;;  %v582_v48 = vpop.f32.mrb[63].mxu1 }
 0x1b9   :  { %652 = vsyncpa [#allocation3], 1 }
 0x1ba   :  { %653 = vsyncpa [#allocation5], 1 }

// kernel: gcn_layer.3
= control target key start
LH: loop header
LB: loop body
LE: loop exit
PB: predicated region body
PF: predicated region fallthrough
CT: control target
= control target key end

     0   :  { %8 = vsyncpa [#allocation3], 0  ;;  %s1832_s0 = inlined_call_operand.hbm [shape: f32[512,512], index: 0, kind: input, shape index: {}]   ;;  %s1833_s1 = inlined_call_operand.vmem [shape: f32[512,128], index: 1, kind: input, shape index: {}]   ;;  %s1834_s2 = inlined_call_operand.vmem [shape: f32[1,128], index: 2, kind: input, shape index: {}]   ;;  %s1835_s3 = inlined_call_operand.hbm [shape: f32[512,128], index: 3, kind: output, shape index: {}]  }
   0x1   :  { %9 = vsyncpa [#allocation4], 0  ;;  %s1488_s12 = smov [#allocation2]   ;;  %s1440_s16 = scalar_lea.hbm %s1832_s0, 32768 }
   0x2   :  { %s15_s13 = sshll.u32 %s1488_s12, 4  ;;  %p1441_p0 = scmp.ne.s32.totalorder %s1832_s0, %s1440_s16  ;;  %s16_s13 = int_to_ptr.vmem [resolvable:$true] %s15_s13 }
   0x3   :  { %p1444_p1 = scmp.lt.u32.totalorder %s1440_s16, %s1832_s0 }
   0x5   :  { %p1446_p2 = pnand %p1444_p1, %p1441_p0 }
   0x7   :  { %1449 = shalt.err (!%p1446_p2)
}
   0x8   :  { %s1450_s21 = scalar_lea.vmem %s16_s13, 32768  ;;  %p1455_p4 = scmp.lt.s32.totalorder %s16_s13, %s16_s13 }
   0x9   :  { %p1451_p3 = scmp.ne.s32.totalorder %s16_s13, %s1450_s21  ;;  %p1456_p5 = scmp.lt.s32.totalorder %s1450_s21, %s1450_s21 }
   0xb   :  { %p1457_p6 = por %p1456_p5, %p1455_p4 }
   0xd   :  { %p1458_p7 = pnand %p1457_p6, %p1451_p3 }
   0xf   :  { %1461 = shalt.err (!%p1458_p7)
}
  0x10   :  { %s1489_s22 = smov 512   ;;  %s1490_s23 = smov 32  }
  0x11   :  { %21 = dma.hbm_to_vmem [thread:$0]  %s1832_s0, 32768, %s16_s13, [#allocation3], %s1489_s22, %s1489_s22, %s1490_s23  }
  0x12   :  { %1484 = dma.done.wait [#allocation3], 32768  }
  0x13   :  { %1485 = vsyncadd [#allocation3], 4294934528  ;;  %v1491_v0 = vmov 0.0|0.0   ;;  %v285_v1 = vld [vmem:[%s1833_s1] sm:$0xff]  ;;  %v286_v2 = vld [vmem:[%s1833_s1 + $0x8] sm:$0xff]  ;;  %s1492_s17 = smov [#allocation5]  }
  0x14   :  { %1208 = vmatprep.subr.bf16.mxu1 %v1491_v0  ;;  %1256 = vmatprep.subr.bf16.mxu0 %v1491_v0  ;;  %v317_v3 = vld [vmem:[%s1833_s1 + $0x100] sm:$0xff]  ;;  %v1209_v4 = vpack.c.bf16 %v286_v2, %v285_v1  ;;  %v318_v5 = vld [vmem:[%s1833_s1 + $0x108] sm:$0xff]  ;;  %v287_v6 = vld [vmem:[%s1833_s1 + $0x10] sm:$0xff]  ;;  %s1195_s18 = sshll.u32 %s1492_s17, 4  ;;  %s1196_s18 = int_to_ptr.vmem [resolvable:$true] %s1195_s18 }
  0x15   :  { %v288_v7 = vld [vmem:[%s1833_s1 + $0x18] sm:$0xff]  ;;  %v1257_v8 = vpack.c.bf16 %v318_v5, %v317_v3  ;;  %v319_v9 = vld [vmem:[%s1833_s1 + $0x110] sm:$0xff]  ;;  %v289_v13 = vld [vmem:[%s1833_s1 + $0x20] sm:$0xff]  ;;  %p1467_p9 = scmp.lt.s32.totalorder %s1196_s18, %s1196_s18 }
  0x16   :  { %v320_v10 = vld [vmem:[%s1833_s1 + $0x118] sm:$0xff]  ;;  %1210 = vmatpush1.bf16.msra.mxu1 %v1209_v4  ;;  %v1212_v11 = vpack.c.bf16 %v288_v7, %v287_v6  ;;  %v290_v14 = vld [vmem:[%s1833_s1 + $0x28] sm:$0xff]  ;;  %v321_v15 = vld [vmem:[%s1833_s1 + $0x120] sm:$0xff] }
  0x17   :  { %1258 = vmatpush1.bf16.msra.mxu0 %v1257_v8  ;;  %1211 = vmatprep.subr.bf16.mxu1 %v1491_v0  ;;  %v1260_v12 = vpack.c.bf16 %v320_v10, %v319_v9  ;;  %v322_v16 = vld [vmem:[%s1833_s1 + $0x128] sm:$0xff]  ;;  %v1215_v17 = vpack.c.bf16 %v290_v14, %v289_v13  ;;  %v291_v19 = vld [vmem:[%s1833_s1 + $0x30] sm:$0xff]  ;;  %v292_v20 = vld [vmem:[%s1833_s1 + $0x38] sm:$0xff] }
  0x18   :  { %1259 = vmatprep.subr.bf16.mxu0 %v1491_v0  ;;  %v1263_v18 = vpack.c.bf16 %v322_v16, %v321_v15  ;;  %v323_v21 = vld [vmem:[%s1833_s1 + $0x130] sm:$0xff]  ;;  %v324_v22 = vld [vmem:[%s1833_s1 + $0x138] sm:$0xff]  ;;  %v1218_v23 = vpack.c.bf16 %v292_v20, %v291_v19  ;;  %v293_v25 = vld [vmem:[%s1833_s1 + $0x40] sm:$0xff] }
  0x19   :  { %v1266_v24 = vpack.c.bf16 %v324_v22, %v323_v21  ;;  %v294_v26 = vld [vmem:[%s1833_s1 + $0x48] sm:$0xff]  ;;  %v325_v27 = vld [vmem:[%s1833_s1 + $0x140] sm:$0xff]  ;;  %v295_v31 = vld [vmem:[%s1833_s1 + $0x50] sm:$0xff] }
  0x1a   :  { %1213 = vmatpush1.bf16.msra.mxu1 %v1212_v11  ;;  %v326_v28 = vld [vmem:[%s1833_s1 + $0x148] sm:$0xff]  ;;  %v1221_v29 = vpack.c.bf16 %v294_v26, %v293_v25  ;;  %v296_v32 = vld [vmem:[%s1833_s1 + $0x58] sm:$0xff]  ;;  %v327_v33 = vld [vmem:[%s1833_s1 + $0x150] sm:$0xff] }
  0x1b   :  { %1261 = vmatpush1.bf16.msra.mxu0 %v1260_v12  ;;  %1214 = vmatprep.subr.bf16.mxu1 %v1491_v0  ;;  %v1269_v30 = vpack.c.bf16 %v326_v28, %v325_v27  ;;  %v328_v34 = vld [vmem:[%s1833_s1 + $0x158] sm:$0xff]  ;;  %v1224_v35 = vpack.c.bf16 %v296_v32, %v295_v31  ;;  %v297_v37 = vld [vmem:[%s1833_s1 + $0x60] sm:$0xff]  ;;  %v298_v38 = vld [vmem:[%s1833_s1 + $0x68] sm:$0xff] }
  0x1c   :  { %1262 = vmatprep.subr.bf16.mxu0 %v1491_v0  ;;  %v1272_v36 = vpack.c.bf16 %v328_v34, %v327_v33  ;;  %v329_v39 = vld [vmem:[%s1833_s1 + $0x160] sm:$0xff]  ;;  %v330_v40 = vld [vmem:[%s1833_s1 + $0x168] sm:$0xff]  ;;  %v32_v42 = vld [vmem:[#allocation2 + $0x18] sm:$0xff]  ;;  %v1227_v43 = vpack.c.bf16 %v298_v38, %v297_v37 }
  0x1d   :  { %v30_v41 = vld [vmem:[#allocation2 + $0x8] sm:$0xff]  ;;  %805 = vmatprep.mubr.f32.mxu0 %v32_v42  ;;  %v1275_v44 = vpack.c.bf16 %v330_v40, %v329_v39  ;;  %v299_v45 = vld [vmem:[%s1833_s1 + $0x70] sm:$0xff]  ;;  %v300_v46 = vld [vmem:[%s1833_s1 + $0x78] sm:$0xff] }
  0x1e   :  { %1216 = vmatpush1.bf16.msra.mxu1 %v1215_v17  ;;  %420 = vmatprep.mubr.f32.mxu1 %v30_v41  ;;  %v331_v47 = vld [vmem:[%s1833_s1 + $0x170] sm:$0xff]  ;;  %v332_v48 = vld [vmem:[%s1833_s1 + $0x178] sm:$0xff]  ;;  %v1230_v49 = vpack.c.bf16 %v300_v46, %v299_v45  ;;  %v301_v51 = vld [vmem:[%s1833_s1 + $0x80] sm:$0xff] }
  0x1f   :  { %1264 = vmatpush1.bf16.msra.mxu0 %v1263_v18  ;;  %1217 = vmatprep.subr.bf16.mxu1 %v1491_v0  ;;  %v1278_v50 = vpack.c.bf16 %v332_v48, %v331_v47  ;;  %v302_v52 = vld [vmem:[%s1833_s1 + $0x88] sm:$0xff]  ;;  %v333_v53 = vld [vmem:[%s1833_s1 + $0x180] sm:$0xff]  ;;  %v303_v57 = vld [vmem:[%s1833_s1 + $0x90] sm:$0xff] }
  0x20   :  { %1265 = vmatprep.subr.bf16.mxu0 %v1491_v0  ;;  %v334_v54 = vld [vmem:[%s1833_s1 + $0x188] sm:$0xff]  ;;  %v1233_v55 = vpack.c.bf16 %v302_v52, %v301_v51  ;;  %v304_v58 = vld [vmem:[%s1833_s1 + $0x98] sm:$0xff]  ;;  %v335_v59 = vld [vmem:[%s1833_s1 + $0x190] sm:$0xff] }
  0x21   :  { %v1281_v56 = vpack.c.bf16 %v334_v54, %v333_v53  ;;  %v336_v60 = vld [vmem:[%s1833_s1 + $0x198] sm:$0xff]  ;;  %v1236_v61 = vpack.c.bf16 %v304_v58, %v303_v57  ;;  %v305_v63 = vld [vmem:[%s1833_s1 + $0xa0] sm:$0xff]  ;;  %v306_v1 = vld [vmem:[%s1833_s1 + $0xa8] sm:$0xff] }
  0x22   :  { %1219 = vmatpush1.bf16.msra.mxu1 %v1218_v23  ;;  %v1284_v62 = vpack.c.bf16 %v336_v60, %v335_v59  ;;  %v337_v2 = vld [vmem:[%s1833_s1 + $0x1a0] sm:$0xff]  ;;  %v338_v3 = vld [vmem:[%s1833_s1 + $0x1a8] sm:$0xff]  ;;  %v1239_v4 = vpack.c.bf16 %v306_v1, %v305_v63  ;;  %v307_v6 = vld [vmem:[%s1833_s1 + $0xb0] sm:$0xff] }
  0x23   :  { %1267 = vmatpush1.bf16.msra.mxu0 %v1266_v24  ;;  %1220 = vmatprep.subr.bf16.mxu1 %v1491_v0  ;;  %v1287_v5 = vpack.c.bf16 %v338_v3, %v337_v2  ;;  %v308_v7 = vld [vmem:[%s1833_s1 + $0xb8] sm:$0xff]  ;;  %v339_v8 = vld [vmem:[%s1833_s1 + $0x1b0] sm:$0xff]  ;;  %v309_v12 = vld [vmem:[%s1833_s1 + $0xc0] sm:$0xff] }
  0x24   :  { %1268 = vmatprep.subr.bf16.mxu0 %v1491_v0  ;;  %v340_v9 = vld [vmem:[%s1833_s1 + $0x1b8] sm:$0xff]  ;;  %v1242_v10 = vpack.c.bf16 %v308_v7, %v307_v6  ;;  %v310_v13 = vld [vmem:[%s1833_s1 + $0xc8] sm:$0xff]  ;;  %v341_v14 = vld [vmem:[%s1833_s1 + $0x1c0] sm:$0xff] }
  0x25   :  { %v1290_v11 = vpack.c.bf16 %v340_v9, %v339_v8  ;;  %v342_v15 = vld [vmem:[%s1833_s1 + $0x1c8] sm:$0xff]  ;;  %v1245_v16 = vpack.c.bf16 %v310_v13, %v309_v12  ;;  %v311_v18 = vld [vmem:[%s1833_s1 + $0xd0] sm:$0xff]  ;;  %v312_v19 = vld [vmem:[%s1833_s1 + $0xd8] sm:$0xff] }
  0x26   :  { %1222 = vmatpush1.bf16.msra.mxu1 %v1221_v29  ;;  %v1293_v17 = vpack.c.bf16 %v342_v15, %v341_v14  ;;  %v343_v20 = vld [vmem:[%s1833_s1 + $0x1d0] sm:$0xff]  ;;  %v344_v21 = vld [vmem:[%s1833_s1 + $0x1d8] sm:$0xff]  ;;  %v1248_v22 = vpack.c.bf16 %v312_v19, %v311_v18  ;;  %v313_v24 = vld [vmem:[%s1833_s1 + $0xe0] sm:$0xff] }
  0x27   :  { %1270 = vmatpush1.bf16.msra.mxu0 %v1269_v30  ;;  %1223 = vmatprep.subr.bf16.mxu1 %v1491_v0  ;;  %v1296_v23 = vpack.c.bf16 %v344_v21, %v343_v20  ;;  %v314_v25 = vld [vmem:[%s1833_s1 + $0xe8] sm:$0xff]  ;;  %v345_v26 = vld [vmem:[%s1833_s1 + $0x1e0] sm:$0xff]  ;;  %v315_v30 = vld [vmem:[%s1833_s1 + $0xf0] sm:$0xff] }
  0x28   :  { %1271 = vmatprep.subr.bf16.mxu0 %v1491_v0  ;;  %v346_v27 = vld [vmem:[%s1833_s1 + $0x1e8] sm:$0xff]  ;;  %v1251_v28 = vpack.c.bf16 %v314_v25, %v313_v24  ;;  %v316_v31 = vld [vmem:[%s1833_s1 + $0xf8] sm:$0xff]  ;;  %v347_v32 = vld [vmem:[%s1833_s1 + $0x1f0] sm:$0xff] }
  0x29   :  { %v1299_v29 = vpack.c.bf16 %v346_v27, %v345_v26  ;;  %v348_v33 = vld [vmem:[%s1833_s1 + $0x1f8] sm:$0xff]  ;;  %v1254_v34 = vpack.c.bf16 %v316_v31, %v315_v30  ;;  %v31_v37 = vld [vmem:[#allocation2 + $0x10] sm:$0xff]  ;;  %v34_v38 = vld [vmem:[#allocation2 + $0x28] sm:$0xff] }
  0x2a   :  { %1225 = vmatpush1.bf16.msra.mxu1 %v1224_v35  ;;  %v1302_v35 = vpack.c.bf16 %v348_v33, %v347_v32  ;;  %v36_v39 = vld [vmem:[#allocation2 + $0x38] sm:$0xff]  ;;  %v33_v40 = vld [vmem:[#allocation2 + $0x20] sm:$0xff]  ;;  %v35_v41 = vld [vmem:[#allocation2 + $0x30] sm:$0xff] }
  0x2b   :  { %1273 = vmatpush1.bf16.msra.mxu0 %v1272_v36  ;;  %1226 = vmatprep.subr.bf16.mxu1 %v1491_v0  ;;  %v29_v36 = vld [vmem:[#allocation2] sm:$0xff]  ;;  %v38_v42 = vld [vmem:[#allocation2 + $0x48] sm:$0xff]  ;;  %v44_v46 = vld [vmem:[#allocation2 + $0x78] sm:$0xff] }
  0x2c   :  { %1274 = vmatprep.subr.bf16.mxu0 %v1491_v0  ;;  %v42_v45 = vld [vmem:[#allocation2 + $0x68] sm:$0xff]  ;;  %v41_v47 = vld [vmem:[#allocation2 + $0x60] sm:$0xff]  ;;  %v43_v48 = vld [vmem:[#allocation2 + $0x70] sm:$0xff] }
  0x2d   :  { %v45_v51 = vld [vmem:[#allocation2 + $0x80] sm:$0xff]  ;;  %v47_v52 = vld [vmem:[#allocation2 + $0x90] sm:$0xff]  ;;  %v50_v53 = vld [vmem:[#allocation2 + $0xa8] sm:$0xff] }
  0x2e   :  { %1228 = vmatpush1.bf16.msra.mxu1 %v1227_v43  ;;  %v40_v43 = vld [vmem:[#allocation2 + $0x58] sm:$0xff]  ;;  %v54_v57 = vld [vmem:[#allocation2 + $0xc8] sm:$0xff]  ;;  %v53_v59 = vld [vmem:[#allocation2 + $0xc0] sm:$0xff] }
  0x2f   :  { %1276 = vmatpush1.bf16.msra.mxu0 %v1275_v44  ;;  %1229 = vmatprep.subr.bf16.mxu1 %v1491_v0  ;;  %v37_v44 = vld [vmem:[#allocation2 + $0x40] sm:$0xff]  ;;  %v52_v54 = vld [vmem:[#allocation2 + $0xb8] sm:$0xff]  ;;  %v55_v60 = vld [vmem:[#allocation2 + $0xd0] sm:$0xff] }
  0x30   :  { %1277 = vmatprep.subr.bf16.mxu0 %v1491_v0  ;;  %v56_v58 = vld [vmem:[#allocation2 + $0xd8] sm:$0xff]  ;;  %v57_v63 = vld [vmem:[#allocation2 + $0xe0] sm:$0xff]  ;;  %v59_v1 = vld [vmem:[#allocation2 + $0xf0] sm:$0xff] }
  0x31   :  { %v62_v2 = vld [vmem:[#allocation2 + $0x108] sm:$0xff]  ;;  %v64_v3 = vld [vmem:[#allocation2 + $0x118] sm:$0xff]  ;;  %v65_v8 = vld [vmem:[#allocation2 + $0x120] sm:$0xff] }
  0x32   :  { %1231 = vmatpush1.bf16.msra.mxu1 %v1230_v49  ;;  %v46_v49 = vld [vmem:[#allocation2 + $0x88] sm:$0xff]  ;;  %v68_v7 = vld [vmem:[#allocation2 + $0x138] sm:$0xff]  ;;  %v67_v9 = vld [vmem:[#allocation2 + $0x130] sm:$0xff] }
  0x33   :  { %1279 = vmatpush1.bf16.msra.mxu0 %v1278_v50  ;;  %1232 = vmatprep.subr.bf16.mxu1 %v1491_v0  ;;  %v48_v50 = vld [vmem:[#allocation2 + $0x98] sm:$0xff]  ;;  %v66_v6 = vld [vmem:[#allocation2 + $0x128] sm:$0xff]  ;;  %v69_v12 = vld [vmem:[#allocation2 + $0x140] sm:$0xff] }
  0x34   :  { %1280 = vmatprep.subr.bf16.mxu0 %v1491_v0  ;;  %v71_v13 = vld [vmem:[#allocation2 + $0x150] sm:$0xff]  ;;  %v74_v14 = vld [vmem:[#allocation2 + $0x168] sm:$0xff]  ;;  %v76_v15 = vld [vmem:[#allocation2 + $0x178] sm:$0xff] }
  0x35   :  { %v78_v18 = vld [vmem:[#allocation2 + $0x188] sm:$0xff]  ;;  %v80_v19 = vld [vmem:[#allocation2 + $0x198] sm:$0xff]  ;;  %v77_v20 = vld [vmem:[#allocation2 + $0x180] sm:$0xff] }
  0x36   :  { %1234 = vmatpush1.bf16.msra.mxu1 %v1233_v55  ;;  %v49_v55 = vld [vmem:[#allocation2 + $0xa0] sm:$0xff]  ;;  %v79_v21 = vld [vmem:[#allocation2 + $0x190] sm:$0xff]  ;;  %v86_v26 = vld [vmem:[#allocation2 + $0x1c8] sm:$0xff] }
  0x37   :  { %1282 = vmatpush1.bf16.msra.mxu0 %v1281_v56  ;;  %1235 = vmatprep.subr.bf16.mxu1 %v1491_v0  ;;  %v51_v56 = vld [vmem:[#allocation2 + $0xb0] sm:$0xff]  ;;  %v81_v24 = vld [vmem:[#allocation2 + $0x1a0] sm:$0xff]  ;;  %v88_v27 = vld [vmem:[#allocation2 + $0x1d8] sm:$0xff] }
  0x38   :  { %1283 = vmatprep.subr.bf16.mxu0 %v1491_v0  ;;  %v83_v25 = vld [vmem:[#allocation2 + $0x1b0] sm:$0xff]  ;;  %v90_v30 = vld [vmem:[#allocation2 + $0x1e8] sm:$0xff]  ;;  %v92_v31 = vld [vmem:[#allocation2 + $0x1f8] sm:$0xff] }
  0x39   :  { %v89_v32 = vld [vmem:[#allocation2 + $0x1e0] sm:$0xff]  ;;  %v91_v33 = vld [vmem:[#allocation2 + $0x1f0] sm:$0xff] }
  0x3a   :  { %1237 = vmatpush1.bf16.msra.mxu1 %v1236_v61  ;;  %v58_v61 = vld [vmem:[#allocation2 + $0xe8] sm:$0xff] }
  0x3b   :  { %1285 = vmatpush1.bf16.msra.mxu0 %v1284_v62  ;;  %1238 = vmatprep.subr.bf16.mxu1 %v1491_v0  ;;  %v60_v62 = vld [vmem:[#allocation2 + $0xf8] sm:$0xff] }
  0x3c   :  { %1286 = vmatprep.subr.bf16.mxu0 %v1491_v0 }
  0x3e   :  { %1240 = vmatpush1.bf16.msra.mxu1 %v1239_v4  ;;  %v61_v4 = vld [vmem:[#allocation2 + $0x100] sm:$0xff] }
  0x3f   :  { %1288 = vmatpush1.bf16.msra.mxu0 %v1287_v5  ;;  %1241 = vmatprep.subr.bf16.mxu1 %v1491_v0  ;;  %v63_v5 = vld [vmem:[#allocation2 + $0x110] sm:$0xff] }
  0x40   :  { %1289 = vmatprep.subr.bf16.mxu0 %v1491_v0 }
  0x42   :  { %1243 = vmatpush1.bf16.msra.mxu1 %v1242_v10  ;;  %v70_v10 = vld [vmem:[#allocation2 + $0x148] sm:$0xff] }
  0x43   :  { %1291 = vmatpush1.bf16.msra.mxu0 %v1290_v11  ;;  %1244 = vmatprep.subr.bf16.mxu1 %v1491_v0  ;;  %v72_v11 = vld [vmem:[#allocation2 + $0x158] sm:$0xff] }
  0x44   :  { %1292 = vmatprep.subr.bf16.mxu0 %v1491_v0 }
  0x46   :  { %1246 = vmatpush1.bf16.msra.mxu1 %v1245_v16  ;;  %v73_v16 = vld [vmem:[#allocation2 + $0x160] sm:$0xff] }
  0x47   :  { %1294 = vmatpush1.bf16.msra.mxu0 %v1293_v17  ;;  %1247 = vmatprep.subr.bf16.mxu1 %v1491_v0  ;;  %v75_v17 = vld [vmem:[#allocation2 + $0x170] sm:$0xff] }
  0x48   :  { %1295 = vmatprep.subr.bf16.mxu0 %v1491_v0 }
  0x4a   :  { %1249 = vmatpush1.bf16.msra.mxu1 %v1248_v22  ;;  %v82_v22 = vld [vmem:[#allocation2 + $0x1a8] sm:$0xff] }
  0x4b   :  { %1297 = vmatpush1.bf16.msra.mxu0 %v1296_v23  ;;  %1250 = vmatprep.subr.bf16.mxu1 %v1491_v0  ;;  %v84_v23 = vld [vmem:[#allocation2 + $0x1b8] sm:$0xff] }
  0x4c   :  { %1298 = vmatprep.subr.bf16.mxu0 %v1491_v0 }
  0x4e   :  { %1252 = vmatpush1.bf16.msra.mxu1 %v1251_v28  ;;  %v85_v28 = vld [vmem:[#allocation2 + $0x1c0] sm:$0xff] }
  0x4f   :  { %1300 = vmatpush1.bf16.msra.mxu0 %v1299_v29  ;;  %1253 = vmatprep.subr.bf16.mxu1 %v1491_v0  ;;  %v87_v29 = vld [vmem:[#allocation2 + $0x1d0] sm:$0xff] }
  0x50   :  { %1301 = vmatprep.subr.bf16.mxu0 %v1491_v0  ;;  %v39_v0 = vld [vmem:[#allocation2 + $0x50] sm:$0xff] }
  0x52   :  { %1255 = vmatpush1.bf16.msra.mxu1 %v1254_v34  ;;  %v94_v34 = vld [vmem:[#allocation2 + $0x208] sm:$0xff] }
  0x53   :  { %1303 = vmatpush1.bf16.msra.mxu0 %v1302_v35  ;;  %v96_v35 = vld [vmem:[#allocation2 + $0x218] sm:$0xff] }
  0x55   :  { %421 = vmatmul.mubr.f32.vlgmr.msra.gmra.mrb[0].mxu1 %v29_v36  ;;  %v93_v36 = vld [vmem:[#allocation2 + $0x200] sm:$0xff] }
  0x56   :  { %806 = vmatmul.mubr.f32.vlgmr.msra.gmra.mrb[0].mxu0 %v31_v37  ;;  %425 = vmatprep.mubr.f32.mxu1 %v34_v38  ;;  %v95_v37 = vld [vmem:[#allocation2 + $0x210] sm:$0xff]  ;;  %v98_v38 = vld [vmem:[#allocation2 + $0x228] sm:$0xff] }
  0x57   :  { %810 = vmatprep.mubr.f32.mxu0 %v36_v39  ;;  %v100_v39 = vld [vmem:[#allocation2 + $0x238] sm:$0xff] }
  0x59   :  { %426 = vmatmul.mubr.f32.gmra.mrb[2].mxu1 %v33_v40  ;;  %v97_v40 = vld [vmem:[#allocation2 + $0x220] sm:$0xff] }
  0x5a   :  { %811 = vmatmul.mubr.f32.gmra.mrb[2].mxu0 %v35_v41  ;;  %430 = vmatprep.mubr.f32.mxu1 %v38_v42  ;;  %v99_v41 = vld [vmem:[#allocation2 + $0x230] sm:$0xff]  ;;  %v102_v42 = vld [vmem:[#allocation2 + $0x248] sm:$0xff] }
  0x5b   :  { %815 = vmatprep.mubr.f32.mxu0 %v40_v43  ;;  %v104_v43 = vld [vmem:[#allocation2 + $0x258] sm:$0xff] }
  0x5d   :  { %431 = vmatmul.mubr.f32.gmra.mrb[4].mxu1 %v37_v44  ;;  %v101_v44 = vld [vmem:[#allocation2 + $0x240] sm:$0xff] }
  0x5e   :  { %816 = vmatmul.mubr.f32.gmra.mrb[4].mxu0 %v39_v0  ;;  %435 = vmatprep.mubr.f32.mxu1 %v42_v45  ;;  %v103_v0 = vld [vmem:[#allocation2 + $0x250] sm:$0xff]  ;;  %v106_v45 = vld [vmem:[#allocation2 + $0x268] sm:$0xff] }
  0x5f   :  { %820 = vmatprep.mubr.f32.mxu0 %v44_v46  ;;  %v108_v46 = vld [vmem:[#allocation2 + $0x278] sm:$0xff] }
  0x61   :  { %436 = vmatmul.mubr.f32.gmra.mrb[6].mxu1 %v41_v47  ;;  %v105_v47 = vld [vmem:[#allocation2 + $0x260] sm:$0xff] }
  0x62   :  { %821 = vmatmul.mubr.f32.gmra.mrb[6].mxu0 %v43_v48  ;;  %440 = vmatprep.mubr.f32.mxu1 %v46_v49  ;;  %v107_v48 = vld [vmem:[#allocation2 + $0x270] sm:$0xff]  ;;  %v110_v49 = vld [vmem:[#allocation2 + $0x288] sm:$0xff] }
  0x63   :  { %825 = vmatprep.mubr.f32.mxu0 %v48_v50  ;;  %v112_v50 = vld [vmem:[#allocation2 + $0x298] sm:$0xff] }
  0x65   :  { %441 = vmatmul.mubr.f32.gmra.mrb[8].mxu1 %v45_v51  ;;  %v109_v51 = vld [vmem:[#allocation2 + $0x280] sm:$0xff] }
  0x66   :  { %826 = vmatmul.mubr.f32.gmra.mrb[8].mxu0 %v47_v52  ;;  %445 = vmatprep.mubr.f32.mxu1 %v50_v53  ;;  %v111_v52 = vld [vmem:[#allocation2 + $0x290] sm:$0xff]  ;;  %v114_v53 = vld [vmem:[#allocation2 + $0x2a8] sm:$0xff] }
  0x67   :  { %830 = vmatprep.mubr.f32.mxu0 %v52_v54  ;;  %v116_v54 = vld [vmem:[#allocation2 + $0x2b8] sm:$0xff] }
  0x69   :  { %446 = vmatmul.mubr.f32.gmra.mrb[10].mxu1 %v49_v55  ;;  %v113_v55 = vld [vmem:[#allocation2 + $0x2a0] sm:$0xff] }
  0x6a   :  { %831 = vmatmul.mubr.f32.gmra.mrb[10].mxu0 %v51_v56  ;;  %450 = vmatprep.mubr.f32.mxu1 %v54_v57  ;;  %v115_v56 = vld [vmem:[#allocation2 + $0x2b0] sm:$0xff]  ;;  %v118_v57 = vld [vmem:[#allocation2 + $0x2c8] sm:$0xff] }
  0x6b   :  { %835 = vmatprep.mubr.f32.mxu0 %v56_v58  ;;  %v120_v58 = vld [vmem:[#allocation2 + $0x2d8] sm:$0xff] }
  0x6d   :  { %451 = vmatmul.mubr.f32.gmra.mrb[12].mxu1 %v53_v59  ;;  %v117_v59 = vld [vmem:[#allocation2 + $0x2c0] sm:$0xff] }
  0x6e   :  { %836 = vmatmul.mubr.f32.gmra.mrb[12].mxu0 %v55_v60  ;;  %455 = vmatprep.mubr.f32.mxu1 %v58_v61  ;;  %v119_v60 = vld [vmem:[#allocation2 + $0x2d0] sm:$0xff]  ;;  %v122_v61 = vld [vmem:[#allocation2 + $0x2e8] sm:$0xff] }
  0x6f   :  { %840 = vmatprep.mubr.f32.mxu0 %v60_v62  ;;  %v124_v62 = vld [vmem:[#allocation2 + $0x2f8] sm:$0xff] }
  0x71   :  { %456 = vmatmul.mubr.f32.gmra.mrb[14].mxu1 %v57_v63  ;;  %v121_v63 = vld [vmem:[#allocation2 + $0x2e0] sm:$0xff] }
  0x72   :  { %841 = vmatmul.mubr.f32.gmra.mrb[14].mxu0 %v59_v1  ;;  %460 = vmatprep.mubr.f32.mxu1 %v62_v2  ;;  %v123_v1 = vld [vmem:[#allocation2 + $0x2f0] sm:$0xff]  ;;  %v126_v2 = vld [vmem:[#allocation2 + $0x308] sm:$0xff] }
  0x73   :  { %845 = vmatprep.mubr.f32.mxu0 %v64_v3  ;;  %v128_v3 = vld [vmem:[#allocation2 + $0x318] sm:$0xff] }
  0x75   :  { %461 = vmatmul.mubr.f32.gmra.mrb[16].mxu1 %v61_v4  ;;  %v125_v4 = vld [vmem:[#allocation2 + $0x300] sm:$0xff] }
  0x76   :  { %846 = vmatmul.mubr.f32.gmra.mrb[16].mxu0 %v63_v5  ;;  %465 = vmatprep.mubr.f32.mxu1 %v66_v6  ;;  %v127_v5 = vld [vmem:[#allocation2 + $0x310] sm:$0xff]  ;;  %v130_v6 = vld [vmem:[#allocation2 + $0x328] sm:$0xff] }
  0x77   :  { %850 = vmatprep.mubr.f32.mxu0 %v68_v7  ;;  %v132_v7 = vld [vmem:[#allocation2 + $0x338] sm:$0xff] }
  0x79   :  { %466 = vmatmul.mubr.f32.gmra.mrb[18].mxu1 %v65_v8  ;;  %v129_v8 = vld [vmem:[#allocation2 + $0x320] sm:$0xff] }
  0x7a   :  { %851 = vmatmul.mubr.f32.gmra.mrb[18].mxu0 %v67_v9  ;;  %470 = vmatprep.mubr.f32.mxu1 %v70_v10  ;;  %v131_v9 = vld [vmem:[#allocation2 + $0x330] sm:$0xff]  ;;  %v134_v10 = vld [vmem:[#allocation2 + $0x348] sm:$0xff] }
  0x7b   :  { %855 = vmatprep.mubr.f32.mxu0 %v72_v11  ;;  %v136_v11 = vld [vmem:[#allocation2 + $0x358] sm:$0xff] }
  0x7d   :  { %471 = vmatmul.mubr.f32.gmra.mrb[20].mxu1 %v69_v12  ;;  %v133_v12 = vld [vmem:[#allocation2 + $0x340] sm:$0xff] }
  0x7e   :  { %856 = vmatmul.mubr.f32.gmra.mrb[20].mxu0 %v71_v13  ;;  %475 = vmatprep.mubr.f32.mxu1 %v74_v14  ;;  %v135_v13 = vld [vmem:[#allocation2 + $0x350] sm:$0xff]  ;;  %v138_v14 = vld [vmem:[#allocation2 + $0x368] sm:$0xff] }
  0x7f   :  { %860 = vmatprep.mubr.f32.mxu0 %v76_v15  ;;  %v140_v15 = vld [vmem:[#allocation2 + $0x378] sm:$0xff] }
  0x81   :  { %476 = vmatmul.mubr.f32.gmra.mrb[22].mxu1 %v73_v16  ;;  %v137_v16 = vld [vmem:[#allocation2 + $0x360] sm:$0xff] }
  0x82   :  { %861 = vmatmul.mubr.f32.gmra.mrb[22].mxu0 %v75_v17  ;;  %480 = vmatprep.mubr.f32.mxu1 %v78_v18  ;;  %v139_v17 = vld [vmem:[#allocation2 + $0x370] sm:$0xff]  ;;  %v142_v18 = vld [vmem:[#allocation2 + $0x388] sm:$0xff] }
  0x83   :  { %865 = vmatprep.mubr.f32.mxu0 %v80_v19  ;;  %v144_v19 = vld [vmem:[#allocation2 + $0x398] sm:$0xff] }
  0x85   :  { %481 = vmatmul.mubr.f32.gmra.mrb[24].mxu1 %v77_v20  ;;  %v141_v20 = vld [vmem:[#allocation2 + $0x380] sm:$0xff] }
  0x86   :  { %866 = vmatmul.mubr.f32.gmra.mrb[24].mxu0 %v79_v21  ;;  %485 = vmatprep.mubr.f32.mxu1 %v82_v22  ;;  %v143_v21 = vld [vmem:[#allocation2 + $0x390] sm:$0xff]  ;;  %v146_v22 = vld [vmem:[#allocation2 + $0x3a8] sm:$0xff] }
  0x87   :  { %870 = vmatprep.mubr.f32.mxu0 %v84_v23  ;;  %v148_v23 = vld [vmem:[#allocation2 + $0x3b8] sm:$0xff] }
  0x89   :  { %486 = vmatmul.mubr.f32.gmra.mrb[26].mxu1 %v81_v24  ;;  %v145_v24 = vld [vmem:[#allocation2 + $0x3a0] sm:$0xff] }
  0x8a   :  { %871 = vmatmul.mubr.f32.gmra.mrb[26].mxu0 %v83_v25  ;;  %490 = vmatprep.mubr.f32.mxu1 %v86_v26  ;;  %v147_v25 = vld [vmem:[#allocation2 + $0x3b0] sm:$0xff]  ;;  %v150_v26 = vld [vmem:[#allocation2 + $0x3c8] sm:$0xff] }
  0x8b   :  { %875 = vmatprep.mubr.f32.mxu0 %v88_v27  ;;  %v152_v27 = vld [vmem:[#allocation2 + $0x3d8] sm:$0xff] }
  0x8d   :  { %491 = vmatmul.mubr.f32.gmra.mrb[28].mxu1 %v85_v28  ;;  %v149_v28 = vld [vmem:[#allocation2 + $0x3c0] sm:$0xff] }
  0x8e   :  { %876 = vmatmul.mubr.f32.gmra.mrb[28].mxu0 %v87_v29  ;;  %495 = vmatprep.mubr.f32.mxu1 %v90_v30  ;;  %v151_v29 = vld [vmem:[#allocation2 + $0x3d0] sm:$0xff]  ;;  %v154_v30 = vld [vmem:[#allocation2 + $0x3e8] sm:$0xff] }
  0x8f   :  { %880 = vmatprep.mubr.f32.mxu0 %v92_v31  ;;  %v156_v31 = vld [vmem:[#allocation2 + $0x3f8] sm:$0xff] }
  0x91   :  { %496 = vmatmul.mubr.f32.gmra.mrb[30].mxu1 %v89_v32  ;;  %v153_v32 = vld [vmem:[#allocation2 + $0x3e0] sm:$0xff] }
  0x92   :  { %881 = vmatmul.mubr.f32.gmra.mrb[30].mxu0 %v91_v33  ;;  %500 = vmatprep.mubr.f32.mxu1 %v94_v34  ;;  %v155_v33 = vld [vmem:[#allocation2 + $0x3f0] sm:$0xff]  ;;  %v158_v34 = vld [vmem:[#allocation2 + $0x408] sm:$0xff] }
  0x93   :  { %885 = vmatprep.mubr.f32.mxu0 %v96_v35  ;;  %v160_v35 = vld [vmem:[#allocation2 + $0x418] sm:$0xff] }
  0x95   :  { %501 = vmatmul.mubr.f32.gmra.mrb[32].mxu1 %v93_v36  ;;  %v157_v36 = vld [vmem:[#allocation2 + $0x400] sm:$0xff] }
  0x96   :  { %886 = vmatmul.mubr.f32.gmra.mrb[32].mxu0 %v95_v37  ;;  %505 = vmatprep.mubr.f32.mxu1 %v98_v38  ;;  %v159_v37 = vld [vmem:[#allocation2 + $0x410] sm:$0xff]  ;;  %v162_v38 = vld [vmem:[#allocation2 + $0x428] sm:$0xff] }
  0x97   :  { %890 = vmatprep.mubr.f32.mxu0 %v100_v39  ;;  %v164_v39 = vld [vmem:[#allocation2 + $0x438] sm:$0xff] }
  0x99   :  { %506 = vmatmul.mubr.f32.gmra.mrb[34].mxu1 %v97_v40  ;;  %v161_v40 = vld [vmem:[#allocation2 + $0x420] sm:$0xff] }
  0x9a   :  { %891 = vmatmul.mubr.f32.gmra.mrb[34].mxu0 %v99_v41  ;;  %510 = vmatprep.mubr.f32.mxu1 %v102_v42  ;;  %v163_v41 = vld [vmem:[#allocation2 + $0x430] sm:$0xff]  ;;  %v166_v42 = vld [vmem:[#allocation2 + $0x448] sm:$0xff] }
  0x9b   :  { %895 = vmatprep.mubr.f32.mxu0 %v104_v43  ;;  %v168_v43 = vld [vmem:[#allocation2 + $0x458] sm:$0xff] }
  0x9d   :  { %511 = vmatmul.mubr.f32.gmra.mrb[36].mxu1 %v101_v44  ;;  %v165_v44 = vld [vmem:[#allocation2 + $0x440] sm:$0xff] }
  0x9e   :  { %896 = vmatmul.mubr.f32.gmra.mrb[36].mxu0 %v103_v0  ;;  %515 = vmatprep.mubr.f32.mxu1 %v106_v45  ;;  %v167_v0 = vld [vmem:[#allocation2 + $0x450] sm:$0xff]  ;;  %v170_v45 = vld [vmem:[#allocation2 + $0x468] sm:$0xff] }
  0x9f   :  { %900 = vmatprep.mubr.f32.mxu0 %v108_v46  ;;  %v172_v46 = vld [vmem:[#allocation2 + $0x478] sm:$0xff] }
  0xa1   :  { %516 = vmatmul.mubr.f32.gmra.mrb[38].mxu1 %v105_v47  ;;  %v169_v47 = vld [vmem:[#allocation2 + $0x460] sm:$0xff] }
  0xa2   :  { %901 = vmatmul.mubr.f32.gmra.mrb[38].mxu0 %v107_v48  ;;  %520 = vmatprep.mubr.f32.mxu1 %v110_v49  ;;  %v171_v48 = vld [vmem:[#allocation2 + $0x470] sm:$0xff]  ;;  %v174_v49 = vld [vmem:[#allocation2 + $0x488] sm:$0xff] }
  0xa3   :  { %905 = vmatprep.mubr.f32.mxu0 %v112_v50  ;;  %v176_v50 = vld [vmem:[#allocation2 + $0x498] sm:$0xff] }
  0xa5   :  { %521 = vmatmul.mubr.f32.gmra.mrb[40].mxu1 %v109_v51  ;;  %v173_v51 = vld [vmem:[#allocation2 + $0x480] sm:$0xff] }
  0xa6   :  { %906 = vmatmul.mubr.f32.gmra.mrb[40].mxu0 %v111_v52  ;;  %525 = vmatprep.mubr.f32.mxu1 %v114_v53  ;;  %v175_v52 = vld [vmem:[#allocation2 + $0x490] sm:$0xff]  ;;  %v178_v53 = vld [vmem:[#allocation2 + $0x4a8] sm:$0xff] }
  0xa7   :  { %910 = vmatprep.mubr.f32.mxu0 %v116_v54  ;;  %v180_v54 = vld [vmem:[#allocation2 + $0x4b8] sm:$0xff] }
  0xa9   :  { %526 = vmatmul.mubr.f32.gmra.mrb[42].mxu1 %v113_v55  ;;  %v177_v55 = vld [vmem:[#allocation2 + $0x4a0] sm:$0xff] }
  0xaa   :  { %911 = vmatmul.mubr.f32.gmra.mrb[42].mxu0 %v115_v56  ;;  %530 = vmatprep.mubr.f32.mxu1 %v118_v57  ;;  %v179_v56 = vld [vmem:[#allocation2 + $0x4b0] sm:$0xff]  ;;  %v182_v57 = vld [vmem:[#allocation2 + $0x4c8] sm:$0xff] }
  0xab   :  { %915 = vmatprep.mubr.f32.mxu0 %v120_v58  ;;  %v184_v58 = vld [vmem:[#allocation2 + $0x4d8] sm:$0xff] }
  0xad   :  { %531 = vmatmul.mubr.f32.gmra.mrb[44].mxu1 %v117_v59  ;;  %v181_v59 = vld [vmem:[#allocation2 + $0x4c0] sm:$0xff] }
  0xae   :  { %916 = vmatmul.mubr.f32.gmra.mrb[44].mxu0 %v119_v60  ;;  %535 = vmatprep.mubr.f32.mxu1 %v122_v61  ;;  %v183_v60 = vld [vmem:[#allocation2 + $0x4d0] sm:$0xff]  ;;  %v186_v61 = vld [vmem:[#allocation2 + $0x4e8] sm:$0xff] }
  0xaf   :  { %920 = vmatprep.mubr.f32.mxu0 %v124_v62  ;;  %v188_v62 = vld [vmem:[#allocation2 + $0x4f8] sm:$0xff] }
  0xb1   :  { %536 = vmatmul.mubr.f32.gmra.mrb[46].mxu1 %v121_v63  ;;  %v185_v63 = vld [vmem:[#allocation2 + $0x4e0] sm:$0xff] }
  0xb2   :  { %921 = vmatmul.mubr.f32.gmra.mrb[46].mxu0 %v123_v1  ;;  %540 = vmatprep.mubr.f32.mxu1 %v126_v2  ;;  %v187_v1 = vld [vmem:[#allocation2 + $0x4f0] sm:$0xff]  ;;  %v190_v2 = vld [vmem:[#allocation2 + $0x508] sm:$0xff] }
  0xb3   :  { %925 = vmatprep.mubr.f32.mxu0 %v128_v3  ;;  %v192_v3 = vld [vmem:[#allocation2 + $0x518] sm:$0xff] }
  0xb5   :  { %541 = vmatmul.mubr.f32.gmra.mrb[48].mxu1 %v125_v4  ;;  %v189_v4 = vld [vmem:[#allocation2 + $0x500] sm:$0xff] }
  0xb6   :  { %926 = vmatmul.mubr.f32.gmra.mrb[48].mxu0 %v127_v5  ;;  %545 = vmatprep.mubr.f32.mxu1 %v130_v6  ;;  %v191_v5 = vld [vmem:[#allocation2 + $0x510] sm:$0xff]  ;;  %v194_v6 = vld [vmem:[#allocation2 + $0x528] sm:$0xff] }
  0xb7   :  { %930 = vmatprep.mubr.f32.mxu0 %v132_v7  ;;  %v196_v7 = vld [vmem:[#allocation2 + $0x538] sm:$0xff] }
  0xb9   :  { %546 = vmatmul.mubr.f32.gmra.mrb[50].mxu1 %v129_v8  ;;  %v193_v8 = vld [vmem:[#allocation2 + $0x520] sm:$0xff] }
  0xba   :  { %931 = vmatmul.mubr.f32.gmra.mrb[50].mxu0 %v131_v9  ;;  %550 = vmatprep.mubr.f32.mxu1 %v134_v10  ;;  %v195_v9 = vld [vmem:[#allocation2 + $0x530] sm:$0xff]  ;;  %v198_v10 = vld [vmem:[#allocation2 + $0x548] sm:$0xff] }
  0xbb   :  { %935 = vmatprep.mubr.f32.mxu0 %v136_v11  ;;  %v200_v11 = vld [vmem:[#allocation2 + $0x558] sm:$0xff] }
  0xbd   :  { %551 = vmatmul.mubr.f32.gmra.mrb[52].mxu1 %v133_v12  ;;  %v197_v12 = vld [vmem:[#allocation2 + $0x540] sm:$0xff] }
  0xbe   :  { %936 = vmatmul.mubr.f32.gmra.mrb[52].mxu0 %v135_v13  ;;  %555 = vmatprep.mubr.f32.mxu1 %v138_v14  ;;  %v199_v13 = vld [vmem:[#allocation2 + $0x550] sm:$0xff]  ;;  %v202_v14 = vld [vmem:[#allocation2 + $0x568] sm:$0xff] }
  0xbf   :  { %940 = vmatprep.mubr.f32.mxu0 %v140_v15  ;;  %v204_v15 = vld [vmem:[#allocation2 + $0x578] sm:$0xff] }
  0xc1   :  { %556 = vmatmul.mubr.f32.gmra.mrb[54].mxu1 %v137_v16  ;;  %v201_v16 = vld [vmem:[#allocation2 + $0x560] sm:$0xff] }
  0xc2   :  { %941 = vmatmul.mubr.f32.gmra.mrb[54].mxu0 %v139_v17  ;;  %560 = vmatprep.mubr.f32.mxu1 %v142_v18  ;;  %v203_v17 = vld [vmem:[#allocation2 + $0x570] sm:$0xff]  ;;  %v206_v18 = vld [vmem:[#allocation2 + $0x588] sm:$0xff] }
  0xc3   :  { %945 = vmatprep.mubr.f32.mxu0 %v144_v19  ;;  %v208_v19 = vld [vmem:[#allocation2 + $0x598] sm:$0xff] }
  0xc5   :  { %561 = vmatmul.mubr.f32.gmra.mrb[56].mxu1 %v141_v20  ;;  %v205_v20 = vld [vmem:[#allocation2 + $0x580] sm:$0xff] }
  0xc6   :  { %946 = vmatmul.mubr.f32.gmra.mrb[56].mxu0 %v143_v21  ;;  %565 = vmatprep.mubr.f32.mxu1 %v146_v22  ;;  %v207_v21 = vld [vmem:[#allocation2 + $0x590] sm:$0xff]  ;;  %v210_v22 = vld [vmem:[#allocation2 + $0x5a8] sm:$0xff] }
  0xc7   :  { %950 = vmatprep.mubr.f32.mxu0 %v148_v23  ;;  %v212_v23 = vld [vmem:[#allocation2 + $0x5b8] sm:$0xff] }
  0xc9   :  { %566 = vmatmul.mubr.f32.gmra.mrb[58].mxu1 %v145_v24  ;;  %v209_v24 = vld [vmem:[#allocation2 + $0x5a0] sm:$0xff] }
  0xca   :  { %951 = vmatmul.mubr.f32.gmra.mrb[58].mxu0 %v147_v25  ;;  %570 = vmatprep.mubr.f32.mxu1 %v150_v26  ;;  %v211_v25 = vld [vmem:[#allocation2 + $0x5b0] sm:$0xff]  ;;  %v214_v26 = vld [vmem:[#allocation2 + $0x5c8] sm:$0xff] }
  0xcb   :  { %955 = vmatprep.mubr.f32.mxu0 %v152_v27  ;;  %v216_v27 = vld [vmem:[#allocation2 + $0x5d8] sm:$0xff] }
  0xcd   :  { %571 = vmatmul.mubr.f32.gmra.mrb[60].mxu1 %v149_v28  ;;  %v213_v28 = vld [vmem:[#allocation2 + $0x5c0] sm:$0xff] }
  0xce   :  { %956 = vmatmul.mubr.f32.gmra.mrb[60].mxu0 %v151_v29  ;;  %575 = vmatprep.mubr.f32.mxu1 %v154_v30  ;;  %v215_v29 = vld [vmem:[#allocation2 + $0x5d0] sm:$0xff]  ;;  %v218_v30 = vld [vmem:[#allocation2 + $0x5e8] sm:$0xff] }
  0xcf   :  { %960 = vmatprep.mubr.f32.mxu0 %v156_v31  ;;  %v220_v31 = vld [vmem:[#allocation2 + $0x5f8] sm:$0xff] }
  0xd1   :  { %576 = vmatmul.mubr.f32.gmra.mrb[62].mxu1 %v153_v32  ;;  %v217_v32 = vld [vmem:[#allocation2 + $0x5e0] sm:$0xff] }
  0xd2   :  { %961 = vmatmul.mubr.f32.gmra.mrb[62].mxu0 %v155_v33  ;;  %580 = vmatprep.mubr.f32.mxu1 %v158_v34  ;;  %v219_v33 = vld [vmem:[#allocation2 + $0x5f0] sm:$0xff]  ;;  %v222_v34 = vld [vmem:[#allocation2 + $0x608] sm:$0xff] }
  0xd3   :  { %965 = vmatprep.mubr.f32.mxu0 %v160_v35  ;;  %v224_v35 = vld [vmem:[#allocation2 + $0x618] sm:$0xff] }
  0xd5   :  { %581 = vmatmul.mubr.f32.gmra.mrb[64].mxu1 %v157_v36  ;;  %v221_v36 = vld [vmem:[#allocation2 + $0x600] sm:$0xff] }
  0xd6   :  { %966 = vmatmul.mubr.f32.gmra.mrb[64].mxu0 %v159_v37  ;;  %585 = vmatprep.mubr.f32.mxu1 %v162_v38  ;;  %v223_v37 = vld [vmem:[#allocation2 + $0x610] sm:$0xff]  ;;  %v226_v38 = vld [vmem:[#allocation2 + $0x628] sm:$0xff] }
  0xd7   :  { %970 = vmatprep.mubr.f32.mxu0 %v164_v39  ;;  %v228_v39 = vld [vmem:[#allocation2 + $0x638] sm:$0xff] }
  0xd9   :  { %586 = vmatmul.mubr.f32.gmra.mrb[66].mxu1 %v161_v40  ;;  %v225_v40 = vld [vmem:[#allocation2 + $0x620] sm:$0xff] }
  0xda   :  { %971 = vmatmul.mubr.f32.gmra.mrb[66].mxu0 %v163_v41  ;;  %590 = vmatprep.mubr.f32.mxu1 %v166_v42  ;;  %v227_v41 = vld [vmem:[#allocation2 + $0x630] sm:$0xff]  ;;  %v230_v42 = vld [vmem:[#allocation2 + $0x648] sm:$0xff] }
  0xdb   :  { %975 = vmatprep.mubr.f32.mxu0 %v168_v43  ;;  %v232_v43 = vld [vmem:[#allocation2 + $0x658] sm:$0xff] }
  0xdd   :  { %591 = vmatmul.mubr.f32.gmra.mrb[68].mxu1 %v165_v44  ;;  %v229_v44 = vld [vmem:[#allocation2 + $0x640] sm:$0xff] }
  0xde   :  { %976 = vmatmul.mubr.f32.gmra.mrb[68].mxu0 %v167_v0  ;;  %595 = vmatprep.mubr.f32.mxu1 %v170_v45  ;;  %v231_v0 = vld [vmem:[#allocation2 + $0x650] sm:$0xff]  ;;  %v234_v45 = vld [vmem:[#allocation2 + $0x668] sm:$0xff] }
  0xdf   :  { %980 = vmatprep.mubr.f32.mxu0 %v172_v46  ;;  %v236_v46 = vld [vmem:[#allocation2 + $0x678] sm:$0xff] }
  0xe1   :  { %596 = vmatmul.mubr.f32.gmra.mrb[70].mxu1 %v169_v47  ;;  %v233_v47 = vld [vmem:[#allocation2 + $0x660] sm:$0xff] }
  0xe2   :  { %981 = vmatmul.mubr.f32.gmra.mrb[70].mxu0 %v171_v48  ;;  %600 = vmatprep.mubr.f32.mxu1 %v174_v49  ;;  %v235_v48 = vld [vmem:[#allocation2 + $0x670] sm:$0xff]  ;;  %v238_v49 = vld [vmem:[#allocation2 + $0x688] sm:$0xff] }
  0xe3   :  { %985 = vmatprep.mubr.f32.mxu0 %v176_v50  ;;  %v240_v50 = vld [vmem:[#allocation2 + $0x698] sm:$0xff] }
  0xe5   :  { %601 = vmatmul.mubr.f32.gmra.mrb[72].mxu1 %v173_v51  ;;  %v237_v51 = vld [vmem:[#allocation2 + $0x680] sm:$0xff] }
  0xe6   :  { %986 = vmatmul.mubr.f32.gmra.mrb[72].mxu0 %v175_v52  ;;  %605 = vmatprep.mubr.f32.mxu1 %v178_v53  ;;  %v239_v52 = vld [vmem:[#allocation2 + $0x690] sm:$0xff]  ;;  %v242_v53 = vld [vmem:[#allocation2 + $0x6a8] sm:$0xff] }
  0xe7   :  { %990 = vmatprep.mubr.f32.mxu0 %v180_v54  ;;  %v244_v54 = vld [vmem:[#allocation2 + $0x6b8] sm:$0xff] }
  0xe9   :  { %606 = vmatmul.mubr.f32.gmra.mrb[74].mxu1 %v177_v55  ;;  %v1754_v55 = vld [vmem:[%s1834_s2] ss:$0 sm:$0xff] }
  0xea   :  { %991 = vmatmul.mubr.f32.gmra.mrb[74].mxu0 %v179_v56  ;;  %610 = vmatprep.mubr.f32.mxu1 %v182_v57  ;;  %v241_v56 = vld [vmem:[#allocation2 + $0x6a0] sm:$0xff]  ;;  %v243_v57 = vld [vmem:[#allocation2 + $0x6b0] sm:$0xff] }
  0xeb   :  { %995 = vmatprep.mubr.f32.mxu0 %v184_v58  ;;  %v246_v58 = vld [vmem:[#allocation2 + $0x6c8] sm:$0xff] }
  0xed   :  { %611 = vmatmul.mubr.f32.gmra.mrb[76].mxu1 %v181_v59 }
  0xee   :  { %996 = vmatmul.mubr.f32.gmra.mrb[76].mxu0 %v183_v60  ;;  %615 = vmatprep.mubr.f32.mxu1 %v186_v61  ;;  %v248_v60 = vld [vmem:[#allocation2 + $0x6d8] sm:$0xff] }
  0xef   :  { %1000 = vmatprep.mubr.f32.mxu0 %v188_v62 }
  0xf1   :  { %616 = vmatmul.mubr.f32.gmra.mrb[78].mxu1 %v185_v63 }
  0xf2   :  { %1001 = vmatmul.mubr.f32.gmra.mrb[78].mxu0 %v187_v1  ;;  %620 = vmatprep.mubr.f32.mxu1 %v190_v2  ;;  %v245_v2 = vld [vmem:[#allocation2 + $0x6c0] sm:$0xff] }
  0xf3   :  { %1005 = vmatprep.mubr.f32.mxu0 %v192_v3 }
  0xf5   :  { %621 = vmatmul.mubr.f32.gmra.mrb[80].mxu1 %v189_v4  ;;  %v247_v4 = vld [vmem:[#allocation2 + $0x6d0] sm:$0xff] }
  0xf6   :  { %1006 = vmatmul.mubr.f32.gmra.mrb[80].mxu0 %v191_v5  ;;  %625 = vmatprep.mubr.f32.mxu1 %v194_v6  ;;  %v250_v5 = vld [vmem:[#allocation2 + $0x6e8] sm:$0xff] }
  0xf7   :  { %1010 = vmatprep.mubr.f32.mxu0 %v196_v7  ;;  %v252_v7 = vld [vmem:[#allocation2 + $0x6f8] sm:$0xff] }
  0xf9   :  { %626 = vmatmul.mubr.f32.gmra.mrb[82].mxu1 %v193_v8 }
  0xfa   :  { %1011 = vmatmul.mubr.f32.gmra.mrb[82].mxu0 %v195_v9  ;;  %630 = vmatprep.mubr.f32.mxu1 %v198_v10 }
  0xfb   :  { %1015 = vmatprep.mubr.f32.mxu0 %v200_v11 }
  0xfd   :  { %631 = vmatmul.mubr.f32.gmra.mrb[84].mxu1 %v197_v12  ;;  %v249_v12 = vld [vmem:[#allocation2 + $0x6e0] sm:$0xff] }
  0xfe   :  { %1016 = vmatmul.mubr.f32.gmra.mrb[84].mxu0 %v199_v13  ;;  %635 = vmatprep.mubr.f32.mxu1 %v202_v14  ;;  %v251_v14 = vld [vmem:[#allocation2 + $0x6f0] sm:$0xff] }
  0xff   :  { %1020 = vmatprep.mubr.f32.mxu0 %v204_v15  ;;  %v254_v15 = vld [vmem:[#allocation2 + $0x708] sm:$0xff] }
 0x101   :  { %636 = vmatmul.mubr.f32.gmra.mrb[86].mxu1 %v201_v16 }
 0x102   :  { %1021 = vmatmul.mubr.f32.gmra.mrb[86].mxu0 %v203_v17  ;;  %640 = vmatprep.mubr.f32.mxu1 %v206_v18  ;;  %v256_v17 = vld [vmem:[#allocation2 + $0x718] sm:$0xff] }
 0x103   :  { %1025 = vmatprep.mubr.f32.mxu0 %v208_v19 }
 0x105   :  { %641 = vmatmul.mubr.f32.gmra.mrb[88].mxu1 %v205_v20 }
 0x106   :  { %1026 = vmatmul.mubr.f32.gmra.mrb[88].mxu0 %v207_v21  ;;  %645 = vmatprep.mubr.f32.mxu1 %v210_v22  ;;  %v253_v22 = vld [vmem:[#allocation2 + $0x700] sm:$0xff] }
 0x107   :  { %1030 = vmatprep.mubr.f32.mxu0 %v212_v23 }
 0x109   :  { %646 = vmatmul.mubr.f32.gmra.mrb[90].mxu1 %v209_v24  ;;  %v255_v24 = vld [vmem:[#allocation2 + $0x710] sm:$0xff] }
 0x10a   :  { %1031 = vmatmul.mubr.f32.gmra.mrb[90].mxu0 %v211_v25  ;;  %650 = vmatprep.mubr.f32.mxu1 %v214_v26  ;;  %v258_v25 = vld [vmem:[#allocation2 + $0x728] sm:$0xff] }
 0x10b   :  { %1035 = vmatprep.mubr.f32.mxu0 %v216_v27  ;;  %v260_v27 = vld [vmem:[#allocation2 + $0x738] sm:$0xff] }
 0x10d   :  { %651 = vmatmul.mubr.f32.gmra.mrb[92].mxu1 %v213_v28 }
 0x10e   :  { %1036 = vmatmul.mubr.f32.gmra.mrb[92].mxu0 %v215_v29  ;;  %655 = vmatprep.mubr.f32.mxu1 %v218_v30 }
 0x10f   :  { %1040 = vmatprep.mubr.f32.mxu0 %v220_v31 }
 0x111   :  { %656 = vmatmul.mubr.f32.gmra.mrb[94].mxu1 %v217_v32  ;;  %v257_v32 = vld [vmem:[#allocation2 + $0x720] sm:$0xff] }
 0x112   :  { %1041 = vmatmul.mubr.f32.gmra.mrb[94].mxu0 %v219_v33  ;;  %660 = vmatprep.mubr.f32.mxu1 %v222_v34  ;;  %v259_v34 = vld [vmem:[#allocation2 + $0x730] sm:$0xff] }
 0x113   :  { %1045 = vmatprep.mubr.f32.mxu0 %v224_v35  ;;  %v262_v35 = vld [vmem:[#allocation2 + $0x748] sm:$0xff] }
 0x115   :  { %661 = vmatmul.mubr.f32.gmra.mrb[96].mxu1 %v221_v36 }
 0x116   :  { %1046 = vmatmul.mubr.f32.gmra.mrb[96].mxu0 %v223_v37  ;;  %665 = vmatprep.mubr.f32.mxu1 %v226_v38  ;;  %v264_v37 = vld [vmem:[#allocation2 + $0x758] sm:$0xff] }
 0x117   :  { %1050 = vmatprep.mubr.f32.mxu0 %v228_v39 }
 0x119   :  { %666 = vmatmul.mubr.f32.gmra.mrb[98].mxu1 %v225_v40 }
 0x11a   :  { %1051 = vmatmul.mubr.f32.gmra.mrb[98].mxu0 %v227_v41  ;;  %670 = vmatprep.mubr.f32.mxu1 %v230_v42  ;;  %v261_v42 = vld [vmem:[#allocation2 + $0x740] sm:$0xff] }
 0x11b   :  { %1055 = vmatprep.mubr.f32.mxu0 %v232_v43 }
 0x11d   :  { %671 = vmatmul.mubr.f32.gmra.mrb[100].mxu1 %v229_v44  ;;  %v263_v44 = vld [vmem:[#allocation2 + $0x750] sm:$0xff] }
 0x11e   :  { %1056 = vmatmul.mubr.f32.gmra.mrb[100].mxu0 %v231_v0  ;;  %675 = vmatprep.mubr.f32.mxu1 %v234_v45  ;;  %v266_v0 = vld [vmem:[#allocation2 + $0x768] sm:$0xff] }
 0x11f   :  { %1060 = vmatprep.mubr.f32.mxu0 %v236_v46  ;;  %v268_v46 = vld [vmem:[#allocation2 + $0x778] sm:$0xff] }
 0x121   :  { %676 = vmatmul.mubr.f32.gmra.mrb[102].mxu1 %v233_v47 }
 0x122   :  { %1061 = vmatmul.mubr.f32.gmra.mrb[102].mxu0 %v235_v48  ;;  %680 = vmatprep.mubr.f32.mxu1 %v238_v49 }
 0x123   :  { %1065 = vmatprep.mubr.f32.mxu0 %v240_v50 }
 0x125   :  { %681 = vmatmul.mubr.f32.gmra.mrb[104].mxu1 %v237_v51  ;;  %v265_v51 = vld [vmem:[#allocation2 + $0x760] sm:$0xff] }
 0x126   :  { %1066 = vmatmul.mubr.f32.gmra.mrb[104].mxu0 %v239_v52  ;;  %685 = vmatprep.mubr.f32.mxu1 %v242_v53  ;;  %v267_v53 = vld [vmem:[#allocation2 + $0x770] sm:$0xff] }
 0x127   :  { %1070 = vmatprep.mubr.f32.mxu0 %v244_v54  ;;  %v270_v54 = vld [vmem:[#allocation2 + $0x788] sm:$0xff] }
 0x128   :  { %v422_v59 = vpop.f32.mrb[0].mxu1 }
 0x129   :  { %v423_v61 = vadd.f32 %v1754_v55, %v422_v59  ;;  %v424_v62 = vpop.f32.mrb[1].mxu1  ;;  %686 = vmatmul.mubr.f32.gmra.mrb[106].mxu1 %v241_v56  ;;  %v807_v63 = vpop.f32.mrb[0].mxu0 }
 0x12a   :  { %v809_v1 = vpop.f32.mrb[1].mxu0  ;;  %1071 = vmatmul.mubr.f32.gmra.mrb[106].mxu0 %v243_v57  ;;  %690 = vmatprep.mubr.f32.mxu1 %v246_v58  ;;  %v272_v57 = vld [vmem:[#allocation2 + $0x798] sm:$0xff]  ;;  %v269_v62 = vld [vmem:[#allocation2 + $0x780] sm:$0xff] }
 0x12b   :  { %v808_v3 = vadd.f32 %v807_v63, %v423_v61  ;;  %1075 = vmatprep.mubr.f32.mxu0 %v248_v60  ;;  %v271_v1 = vld [vmem:[#allocation2 + $0x790] sm:$0xff] }
 0x12c   :  { %v427_v6 = vpop.f32.mrb[2].mxu1 }
 0x12d   :  { %1126 = vst [vmem:[#allocation5] sm:$0xff] %v808_v3  ;;  %v428_v8 = vadd.f32 %v1754_v55, %v427_v6  ;;  %v429_v9 = vpop.f32.mrb[3].mxu1  ;;  %691 = vmatmul.mubr.f32.gmra.mrb[108].mxu1 %v245_v2  ;;  %v812_v10 = vpop.f32.mrb[2].mxu0  ;;  %v274_v2 = vld [vmem:[#allocation2 + $0x7a8] sm:$0xff] }
 0x12e   :  { %v814_v11 = vpop.f32.mrb[3].mxu0  ;;  %1076 = vmatmul.mubr.f32.gmra.mrb[108].mxu0 %v247_v4  ;;  %695 = vmatprep.mubr.f32.mxu1 %v250_v5  ;;  %v276_v4 = vld [vmem:[#allocation2 + $0x7b8] sm:$0xff]  ;;  %v273_v9 = vld [vmem:[#allocation2 + $0x7a0] sm:$0xff] }
 0x12f   :  { %v813_v13 = vadd.f32 %v812_v10, %v428_v8  ;;  %1080 = vmatprep.mubr.f32.mxu0 %v252_v7  ;;  %v275_v11 = vld [vmem:[#allocation2 + $0x7b0] sm:$0xff] }
 0x130   :  { %v432_v16 = vpop.f32.mrb[4].mxu1 }
 0x131   :  { %1127 = vst [vmem:[#allocation5 + $0x8] sm:$0xff] %v813_v13  ;;  %v433_v18 = vadd.f32 %v1754_v55, %v432_v16  ;;  %v434_v19 = vpop.f32.mrb[5].mxu1  ;;  %696 = vmatmul.mubr.f32.gmra.mrb[110].mxu1 %v249_v12  ;;  %v817_v20 = vpop.f32.mrb[4].mxu0  ;;  %v278_v12 = vld [vmem:[#allocation2 + $0x7c8] sm:$0xff] }
 0x132   :  { %v819_v21 = vpop.f32.mrb[5].mxu0  ;;  %1081 = vmatmul.mubr.f32.gmra.mrb[110].mxu0 %v251_v14  ;;  %700 = vmatprep.mubr.f32.mxu1 %v254_v15  ;;  %v280_v14 = vld [vmem:[#allocation2 + $0x7d8] sm:$0xff]  ;;  %v277_v19 = vld [vmem:[#allocation2 + $0x7c0] sm:$0xff] }
 0x133   :  { %v818_v23 = vadd.f32 %v817_v20, %v433_v18  ;;  %1085 = vmatprep.mubr.f32.mxu0 %v256_v17  ;;  %v279_v21 = vld [vmem:[#allocation2 + $0x7d0] sm:$0xff] }
 0x134   :  { %v437_v26 = vpop.f32.mrb[6].mxu1 }
 0x135   :  { %1128 = vst [vmem:[#allocation5 + $0x10] sm:$0xff] %v818_v23  ;;  %v438_v28 = vadd.f32 %v1754_v55, %v437_v26  ;;  %v439_v29 = vpop.f32.mrb[7].mxu1  ;;  %701 = vmatmul.mubr.f32.gmra.mrb[112].mxu1 %v253_v22  ;;  %v822_v30 = vpop.f32.mrb[6].mxu0  ;;  %v282_v22 = vld [vmem:[#allocation2 + $0x7e8] sm:$0xff] }
 0x136   :  { %v824_v31 = vpop.f32.mrb[7].mxu0  ;;  %1086 = vmatmul.mubr.f32.gmra.mrb[112].mxu0 %v255_v24  ;;  %705 = vmatprep.mubr.f32.mxu1 %v258_v25  ;;  %v284_v24 = vld [vmem:[#allocation2 + $0x7f8] sm:$0xff]  ;;  %v281_v29 = vld [vmem:[#allocation2 + $0x7e0] sm:$0xff] }
 0x137   :  { %v823_v33 = vadd.f32 %v822_v30, %v438_v28  ;;  %1090 = vmatprep.mubr.f32.mxu0 %v260_v27  ;;  %v283_v31 = vld [vmem:[#allocation2 + $0x7f0] sm:$0xff] }
 0x138   :  { %v442_v36 = vpop.f32.mrb[8].mxu1 }
 0x139   :  { %1129 = vst [vmem:[#allocation5 + $0x18] sm:$0xff] %v823_v33  ;;  %v443_v38 = vadd.f32 %v1754_v55, %v442_v36  ;;  %v444_v39 = vpop.f32.mrb[9].mxu1  ;;  %706 = vmatmul.mubr.f32.gmra.mrb[114].mxu1 %v257_v32  ;;  %v827_v40 = vpop.f32.mrb[8].mxu0 }
 0x13a   :  { %v829_v41 = vpop.f32.mrb[9].mxu0  ;;  %1091 = vmatmul.mubr.f32.gmra.mrb[114].mxu0 %v259_v34  ;;  %710 = vmatprep.mubr.f32.mxu1 %v262_v35 }
 0x13b   :  { %v828_v43 = vadd.f32 %v827_v40, %v443_v38  ;;  %1095 = vmatprep.mubr.f32.mxu0 %v264_v37 }
 0x13c   :  { %v447_v45 = vpop.f32.mrb[10].mxu1 }
 0x13d   :  { %1130 = vst [vmem:[#allocation5 + $0x20] sm:$0xff] %v828_v43  ;;  %v448_v47 = vadd.f32 %v1754_v55, %v447_v45  ;;  %v449_v48 = vpop.f32.mrb[11].mxu1  ;;  %711 = vmatmul.mubr.f32.gmra.mrb[116].mxu1 %v261_v42  ;;  %v832_v49 = vpop.f32.mrb[10].mxu0 }
 0x13e   :  { %v834_v50 = vpop.f32.mrb[11].mxu0  ;;  %1096 = vmatmul.mubr.f32.gmra.mrb[116].mxu0 %v263_v44  ;;  %715 = vmatprep.mubr.f32.mxu1 %v266_v0 }
 0x13f   :  { %v833_v52 = vadd.f32 %v832_v49, %v448_v47  ;;  %1100 = vmatprep.mubr.f32.mxu0 %v268_v46 }
 0x140   :  { %v452_v56 = vpop.f32.mrb[12].mxu1 }
 0x141   :  { %1131 = vst [vmem:[#allocation5 + $0x28] sm:$0xff] %v833_v52  ;;  %v453_v58 = vadd.f32 %v1754_v55, %v452_v56  ;;  %v454_v59 = vpop.f32.mrb[13].mxu1  ;;  %716 = vmatmul.mubr.f32.gmra.mrb[118].mxu1 %v265_v51  ;;  %v837_v60 = vpop.f32.mrb[12].mxu0 }
 0x142   :  { %v839_v61 = vpop.f32.mrb[13].mxu0  ;;  %1101 = vmatmul.mubr.f32.gmra.mrb[118].mxu0 %v267_v53  ;;  %720 = vmatprep.mubr.f32.mxu1 %v270_v54 }
 0x143   :  { %v838_v63 = vadd.f32 %v837_v60, %v453_v58  ;;  %1105 = vmatprep.mubr.f32.mxu0 %v272_v57 }
 0x144   :  { %v457_v3 = vpop.f32.mrb[14].mxu1 }
 0x145   :  { %1132 = vst [vmem:[#allocation5 + $0x30] sm:$0xff] %v838_v63  ;;  %v458_v5 = vadd.f32 %v1754_v55, %v457_v3  ;;  %v459_v6 = vpop.f32.mrb[15].mxu1  ;;  %721 = vmatmul.mubr.f32.gmra.mrb[120].mxu1 %v269_v62  ;;  %v842_v7 = vpop.f32.mrb[14].mxu0 }
 0x146   :  { %v844_v8 = vpop.f32.mrb[15].mxu0  ;;  %1106 = vmatmul.mubr.f32.gmra.mrb[120].mxu0 %v271_v1  ;;  %725 = vmatprep.mubr.f32.mxu1 %v274_v2 }
 0x147   :  { %v843_v10 = vadd.f32 %v842_v7, %v458_v5  ;;  %1110 = vmatprep.mubr.f32.mxu0 %v276_v4 }
 0x148   :  { %v462_v13 = vpop.f32.mrb[16].mxu1 }
 0x149   :  { %1133 = vst [vmem:[#allocation5 + $0x38] sm:$0xff] %v843_v10  ;;  %v463_v15 = vadd.f32 %v1754_v55, %v462_v13  ;;  %v464_v16 = vpop.f32.mrb[17].mxu1  ;;  %726 = vmatmul.mubr.f32.gmra.mrb[122].mxu1 %v273_v9  ;;  %v847_v17 = vpop.f32.mrb[16].mxu0 }
 0x14a   :  { %v849_v18 = vpop.f32.mrb[17].mxu0  ;;  %1111 = vmatmul.mubr.f32.gmra.mrb[122].mxu0 %v275_v11  ;;  %730 = vmatprep.mubr.f32.mxu1 %v278_v12 }
 0x14b   :  { %v848_v20 = vadd.f32 %v847_v17, %v463_v15  ;;  %1115 = vmatprep.mubr.f32.mxu0 %v280_v14 }
 0x14c   :  { %v467_v23 = vpop.f32.mrb[18].mxu1 }
 0x14d   :  { %1134 = vst [vmem:[#allocation5 + $0x40] sm:$0xff] %v848_v20  ;;  %v468_v25 = vadd.f32 %v1754_v55, %v467_v23  ;;  %v469_v26 = vpop.f32.mrb[19].mxu1  ;;  %731 = vmatmul.mubr.f32.gmra.mrb[124].mxu1 %v277_v19  ;;  %v852_v27 = vpop.f32.mrb[18].mxu0 }
 0x14e   :  { %v854_v28 = vpop.f32.mrb[19].mxu0  ;;  %1116 = vmatmul.mubr.f32.gmra.mrb[124].mxu0 %v279_v21  ;;  %735 = vmatprep.mubr.f32.mxu1 %v282_v22 }
 0x14f   :  { %v853_v30 = vadd.f32 %v852_v27, %v468_v25  ;;  %1120 = vmatprep.mubr.f32.mxu0 %v284_v24 }
 0x150   :  { %v472_v32 = vpop.f32.mrb[20].mxu1 }
 0x151   :  { %1135 = vst [vmem:[#allocation5 + $0x48] sm:$0xff] %v853_v30  ;;  %v473_v33 = vadd.f32 %v1754_v55, %v472_v32  ;;  %v474_v34 = vpop.f32.mrb[21].mxu1  ;;  %736 = vmatmul.mubr.f32.gmra.mrb[126].mxu1 %v281_v29  ;;  %v857_v35 = vpop.f32.mrb[20].mxu0 }
 0x152   :  { %v859_v36 = vpop.f32.mrb[21].mxu0  ;;  %1121 = vmatmul.mubr.f32.gmra.mrb[126].mxu0 %v283_v31 }
 0x153   :  { %v858_v37 = vadd.f32 %v857_v35, %v473_v33 }
 0x154   :  { %v477_v38 = vpop.f32.mrb[22].mxu1 }
 0x155   :  { %1136 = vst [vmem:[#allocation5 + $0x50] sm:$0xff] %v858_v37  ;;  %v478_v39 = vadd.f32 %v1754_v55, %v477_v38  ;;  %v479_v40 = vpop.f32.mrb[23].mxu1  ;;  %v862_v41 = vpop.f32.mrb[22].mxu0 }
 0x156   :  { %v864_v42 = vpop.f32.mrb[23].mxu0 }
 0x157   :  { %v863_v43 = vadd.f32 %v862_v41, %v478_v39 }
 0x158   :  { %v482_v44 = vpop.f32.mrb[24].mxu1 }
 0x159   :  { %1137 = vst [vmem:[#allocation5 + $0x58] sm:$0xff] %v863_v43  ;;  %v483_v0 = vadd.f32 %v1754_v55, %v482_v44  ;;  %v484_v45 = vpop.f32.mrb[25].mxu1  ;;  %v867_v46 = vpop.f32.mrb[24].mxu0 }
 0x15a   :  { %v869_v47 = vpop.f32.mrb[25].mxu0 }
 0x15b   :  { %v868_v48 = vadd.f32 %v867_v46, %v483_v0 }
 0x15c   :  { %v487_v49 = vpop.f32.mrb[26].mxu1 }
 0x15d   :  { %1138 = vst [vmem:[#allocation5 + $0x60] sm:$0xff] %v868_v48  ;;  %v488_v50 = vadd.f32 %v1754_v55, %v487_v49  ;;  %v489_v51 = vpop.f32.mrb[27].mxu1  ;;  %v872_v52 = vpop.f32.mrb[26].mxu0 }
 0x15e   :  { %v874_v53 = vpop.f32.mrb[27].mxu0 }
 0x15f   :  { %v873_v54 = vadd.f32 %v872_v52, %v488_v50 }
 0x160   :  { %v492_v56 = vpop.f32.mrb[28].mxu1 }
 0x161   :  { %1139 = vst [vmem:[#allocation5 + $0x68] sm:$0xff] %v873_v54  ;;  %v493_v57 = vadd.f32 %v1754_v55, %v492_v56  ;;  %v494_v58 = vpop.f32.mrb[29].mxu1  ;;  %v877_v59 = vpop.f32.mrb[28].mxu0 }
 0x162   :  { %v879_v60 = vpop.f32.mrb[29].mxu0 }
 0x163   :  { %v878_v61 = vadd.f32 %v877_v59, %v493_v57 }
 0x164   :  { %v497_v62 = vpop.f32.mrb[30].mxu1 }
 0x165   :  { %1140 = vst [vmem:[#allocation5 + $0x70] sm:$0xff] %v878_v61  ;;  %v498_v63 = vadd.f32 %v1754_v55, %v497_v62  ;;  %v499_v1 = vpop.f32.mrb[31].mxu1  ;;  %v882_v2 = vpop.f32.mrb[30].mxu0 }
 0x166   :  { %v884_v3 = vpop.f32.mrb[31].mxu0 }
 0x167   :  { %v883_v4 = vadd.f32 %v882_v2, %v498_v63 }
 0x168   :  { %v502_v5 = vpop.f32.mrb[32].mxu1 }
 0x169   :  { %1141 = vst [vmem:[#allocation5 + $0x78] sm:$0xff] %v883_v4  ;;  %v503_v6 = vadd.f32 %v1754_v55, %v502_v5  ;;  %v504_v7 = vpop.f32.mrb[33].mxu1  ;;  %v887_v8 = vpop.f32.mrb[32].mxu0 }
 0x16a   :  { %v889_v9 = vpop.f32.mrb[33].mxu0 }
 0x16b   :  { %v888_v10 = vadd.f32 %v887_v8, %v503_v6 }
 0x16c   :  { %v507_v11 = vpop.f32.mrb[34].mxu1 }
 0x16d   :  { %1142 = vst [vmem:[#allocation5 + $0x80] sm:$0xff] %v888_v10  ;;  %v508_v12 = vadd.f32 %v1754_v55, %v507_v11  ;;  %v509_v13 = vpop.f32.mrb[35].mxu1  ;;  %v892_v14 = vpop.f32.mrb[34].mxu0 }
 0x16e   :  { %v894_v15 = vpop.f32.mrb[35].mxu0 }
 0x16f   :  { %v893_v16 = vadd.f32 %v892_v14, %v508_v12 }
 0x170   :  { %v512_v17 = vpop.f32.mrb[36].mxu1 }
 0x171   :  { %1143 = vst [vmem:[#allocation5 + $0x88] sm:$0xff] %v893_v16  ;;  %v513_v18 = vadd.f32 %v1754_v55, %v512_v17  ;;  %v514_v19 = vpop.f32.mrb[37].mxu1  ;;  %v897_v20 = vpop.f32.mrb[36].mxu0 }
 0x172   :  { %v899_v21 = vpop.f32.mrb[37].mxu0 }
 0x173   :  { %v898_v22 = vadd.f32 %v897_v20, %v513_v18 }
 0x174   :  { %v517_v23 = vpop.f32.mrb[38].mxu1 }
 0x175   :  { %1144 = vst [vmem:[#allocation5 + $0x90] sm:$0xff] %v898_v22  ;;  %v518_v24 = vadd.f32 %v1754_v55, %v517_v23  ;;  %v519_v25 = vpop.f32.mrb[39].mxu1  ;;  %v902_v26 = vpop.f32.mrb[38].mxu0 }
 0x176   :  { %v904_v27 = vpop.f32.mrb[39].mxu0 }
 0x177   :  { %v903_v28 = vadd.f32 %v902_v26, %v518_v24 }
 0x178   :  { %v522_v29 = vpop.f32.mrb[40].mxu1 }
 0x179   :  { %1145 = vst [vmem:[#allocation5 + $0x98] sm:$0xff] %v903_v28  ;;  %v523_v30 = vadd.f32 %v1754_v55, %v522_v29  ;;  %v524_v31 = vpop.f32.mrb[41].mxu1  ;;  %v907_v32 = vpop.f32.mrb[40].mxu0 }
 0x17a   :  { %v909_v33 = vpop.f32.mrb[41].mxu0 }
 0x17b   :  { %v908_v34 = vadd.f32 %v907_v32, %v523_v30 }
 0x17c   :  { %v527_v35 = vpop.f32.mrb[42].mxu1 }
 0x17d   :  { %1146 = vst [vmem:[#allocation5 + $0xa0] sm:$0xff] %v908_v34  ;;  %v528_v36 = vadd.f32 %v1754_v55, %v527_v35  ;;  %v529_v37 = vpop.f32.mrb[43].mxu1  ;;  %v912_v38 = vpop.f32.mrb[42].mxu0 }
 0x17e   :  { %v914_v39 = vpop.f32.mrb[43].mxu0 }
 0x17f   :  { %v913_v40 = vadd.f32 %v912_v38, %v528_v36 }
 0x180   :  { %v532_v41 = vpop.f32.mrb[44].mxu1 }
 0x181   :  { %1147 = vst [vmem:[#allocation5 + $0xa8] sm:$0xff] %v913_v40  ;;  %v533_v42 = vadd.f32 %v1754_v55, %v532_v41  ;;  %v534_v43 = vpop.f32.mrb[45].mxu1  ;;  %v917_v44 = vpop.f32.mrb[44].mxu0 }
 0x182   :  { %v919_v0 = vpop.f32.mrb[45].mxu0 }
 0x183   :  { %v918_v45 = vadd.f32 %v917_v44, %v533_v42 }
 0x184   :  { %v537_v46 = vpop.f32.mrb[46].mxu1 }
 0x185   :  { %1148 = vst [vmem:[#allocation5 + $0xb0] sm:$0xff] %v918_v45  ;;  %v538_v47 = vadd.f32 %v1754_v55, %v537_v46  ;;  %v539_v48 = vpop.f32.mrb[47].mxu1  ;;  %v922_v49 = vpop.f32.mrb[46].mxu0 }
 0x186   :  { %v924_v50 = vpop.f32.mrb[47].mxu0 }
 0x187   :  { %v923_v51 = vadd.f32 %v922_v49, %v538_v47 }
 0x188   :  { %v542_v52 = vpop.f32.mrb[48].mxu1 }
 0x189   :  { %1149 = vst [vmem:[#allocation5 + $0xb8] sm:$0xff] %v923_v51  ;;  %v543_v53 = vadd.f32 %v1754_v55, %v542_v52  ;;  %v544_v54 = vpop.f32.mrb[49].mxu1  ;;  %v927_v56 = vpop.f32.mrb[48].mxu0 }
 0x18a   :  { %v929_v57 = vpop.f32.mrb[49].mxu0 }
 0x18b   :  { %v928_v58 = vadd.f32 %v927_v56, %v543_v53 }
 0x18c   :  { %v547_v59 = vpop.f32.mrb[50].mxu1 }
 0x18d   :  { %1150 = vst [vmem:[#allocation5 + $0xc0] sm:$0xff] %v928_v58  ;;  %v548_v60 = vadd.f32 %v1754_v55, %v547_v59  ;;  %v549_v61 = vpop.f32.mrb[51].mxu1  ;;  %v932_v62 = vpop.f32.mrb[50].mxu0 }
 0x18e   :  { %v934_v63 = vpop.f32.mrb[51].mxu0 }
 0x18f   :  { %v933_v1 = vadd.f32 %v932_v62, %v548_v60 }
 0x190   :  { %v552_v2 = vpop.f32.mrb[52].mxu1 }
 0x191   :  { %1151 = vst [vmem:[#allocation5 + $0xc8] sm:$0xff] %v933_v1  ;;  %v553_v3 = vadd.f32 %v1754_v55, %v552_v2  ;;  %v554_v4 = vpop.f32.mrb[53].mxu1  ;;  %v937_v5 = vpop.f32.mrb[52].mxu0 }
 0x192   :  { %v939_v6 = vpop.f32.mrb[53].mxu0 }
 0x193   :  { %v938_v7 = vadd.f32 %v937_v5, %v553_v3 }
 0x194   :  { %v557_v8 = vpop.f32.mrb[54].mxu1 }
 0x195   :  { %1152 = vst [vmem:[#allocation5 + $0xd0] sm:$0xff] %v938_v7  ;;  %v558_v9 = vadd.f32 %v1754_v55, %v557_v8  ;;  %v559_v10 = vpop.f32.mrb[55].mxu1  ;;  %v942_v11 = vpop.f32.mrb[54].mxu0 }
 0x196   :  { %v944_v12 = vpop.f32.mrb[55].mxu0 }
 0x197   :  { %v943_v13 = vadd.f32 %v942_v11, %v558_v9 }
 0x198   :  { %v562_v14 = vpop.f32.mrb[56].mxu1 }
 0x199   :  { %1153 = vst [vmem:[#allocation5 + $0xd8] sm:$0xff] %v943_v13  ;;  %v563_v15 = vadd.f32 %v1754_v55, %v562_v14  ;;  %v564_v16 = vpop.f32.mrb[57].mxu1  ;;  %v947_v17 = vpop.f32.mrb[56].mxu0 }
 0x19a   :  { %v949_v18 = vpop.f32.mrb[57].mxu0 }
 0x19b   :  { %v948_v19 = vadd.f32 %v947_v17, %v563_v15 }
 0x19c   :  { %v567_v20 = vpop.f32.mrb[58].mxu1 }
 0x19d   :  { %1154 = vst [vmem:[#allocation5 + $0xe0] sm:$0xff] %v948_v19  ;;  %v568_v21 = vadd.f32 %v1754_v55, %v567_v20  ;;  %v569_v22 = vpop.f32.mrb[59].mxu1  ;;  %v952_v23 = vpop.f32.mrb[58].mxu0 }
 0x19e   :  { %v954_v24 = vpop.f32.mrb[59].mxu0 }
 0x19f   :  { %v953_v25 = vadd.f32 %v952_v23, %v568_v21 }
 0x1a0   :  { %v572_v26 = vpop.f32.mrb[60].mxu1 }
 0x1a1   :  { %1155 = vst [vmem:[#allocation5 + $0xe8] sm:$0xff] %v953_v25  ;;  %v573_v27 = vadd.f32 %v1754_v55, %v572_v26  ;;  %v574_v28 = vpop.f32.mrb[61].mxu1  ;;  %v957_v29 = vpop.f32.mrb[60].mxu0 }
 0x1a2   :  { %v959_v30 = vpop.f32.mrb[61].mxu0 }
 0x1a3   :  { %v958_v31 = vadd.f32 %v957_v29, %v573_v27 }
 0x1a4   :  { %v577_v32 = vpop.f32.mrb[62].mxu1 }
 0x1a5   :  { %1156 = vst [vmem:[#allocation5 + $0xf0] sm:$0xff] %v958_v31  ;;  %v578_v33 = vadd.f32 %v1754_v55, %v577_v32  ;;  %v579_v34 = vpop.f32.mrb[63].mxu1  ;;  %v962_v35 = vpop.f32.mrb[62].mxu0 }
 0x1a6   :  { %v964_v36 = vpop.f32.mrb[63].mxu0 }
 0x1a7   :  { %v963_v37 = vadd.f32 %v962_v35, %v578_v33 }
 0x1a8   :  { %v582_v38 = vpop.f32.mrb[64].mxu1 }
 0x1a9   :  { %1157 = vst [vmem:[#allocation5 + $0xf8] sm:$0xff] %v963_v37  ;;  %v583_v39 = vadd.f32 %v1754_v55, %v582_v38  ;;  %v584_v40 = vpop.f32.mrb[65].mxu1  ;;  %v967_v41 = vpop.f32.mrb[64].mxu0 }
 0x1aa   :  { %v969_v42 = vpop.f32.mrb[65].mxu0 }
 0x1ab   :  { %v968_v43 = vadd.f32 %v967_v41, %v583_v39 }
 0x1ac   :  { %v587_v44 = vpop.f32.mrb[66].mxu1 }
 0x1ad   :  { %1158 = vst [vmem:[#allocation5 + $0x100] sm:$0xff] %v968_v43  ;;  %v588_v0 = vadd.f32 %v1754_v55, %v587_v44  ;;  %v589_v45 = vpop.f32.mrb[67].mxu1  ;;  %v972_v46 = vpop.f32.mrb[66].mxu0 }
 0x1ae   :  { %v974_v47 = vpop.f32.mrb[67].mxu0 }
 0x1af   :  { %v973_v48 = vadd.f32 %v972_v46, %v588_v0 }
 0x1b0   :  { %v592_v49 = vpop.f32.mrb[68].mxu1 }
 0x1b1   :  { %1159 = vst [vmem:[#allocation5 + $0x108] sm:$0xff] %v973_v48  ;;  %v593_v50 = vadd.f32 %v1754_v55, %v592_v49  ;;  %v594_v51 = vpop.f32.mrb[69].mxu1  ;;  %v977_v52 = vpop.f32.mrb[68].mxu0 }
 0x1b2   :  { %v979_v53 = vpop.f32.mrb[69].mxu0 }
 0x1b3   :  { %v978_v54 = vadd.f32 %v977_v52, %v593_v50 }
 0x1b4   :  { %v597_v56 = vpop.f32.mrb[70].mxu1 }
 0x1b5   :  { %1160 = vst [vmem:[#allocation5 + $0x110] sm:$0xff] %v978_v54  ;;  %v598_v57 = vadd.f32 %v1754_v55, %v597_v56  ;;  %v599_v58 = vpop.f32.mrb[71].mxu1  ;;  %v982_v59 = vpop.f32.mrb[70].mxu0 }
 0x1b6   :  { %v984_v60 = vpop.f32.mrb[71].mxu0 }
 0x1b7   :  { %v983_v61 = vadd.f32 %v982_v59, %v598_v57 }
 0x1b8   :  { %v602_v62 = vpop.f32.mrb[72].mxu1 }
 0x1b9   :  { %1161 = vst [vmem:[#allocation5 + $0x118] sm:$0xff] %v983_v61  ;;  %v603_v63 = vadd.f32 %v1754_v55, %v602_v62  ;;  %v604_v1 = vpop.f32.mrb[73].mxu1  ;;  %v987_v2 = vpop.f32.mrb[72].mxu0 }
 0x1ba   :  { %v989_v3 = vpop.f32.mrb[73].mxu0 }
 0x1bb   :  { %v988_v4 = vadd.f32 %v987_v2, %v603_v63 }
 0x1bc   :  { %v607_v5 = vpop.f32.mrb[74].mxu1 }
 0x1bd   :  { %1162 = vst [vmem:[#allocation5 + $0x120] sm:$0xff] %v988_v4  ;;  %v608_v6 = vadd.f32 %v1754_v55, %v607_v5  ;;  %v609_v7 = vpop.f32.mrb[75].mxu1  ;;  %v992_v8 = vpop.f32.mrb[74].mxu0 }
 0x1be   :  { %v994_v9 = vpop.f32.mrb[75].mxu0 }
 0x1bf   :  { %v993_v10 = vadd.f32 %v992_v8, %v608_v6 }
 0x1c0   :  { %v612_v11 = vpop.f32.mrb[76].mxu1 }
 0x1c1   :  { %1163 = vst [vmem:[#allocation5 + $0x128] sm:$0xff] %v993_v10  ;;  %v613_v12 = vadd.f32 %v1754_v55, %v612_v11  ;;  %v614_v13 = vpop.f32.mrb[77].mxu1  ;;  %v997_v14 = vpop.f32.mrb[76].mxu0 }
 0x1c2   :  { %v999_v15 = vpop.f32.mrb[77].mxu0 }
 0x1c3   :  { %v998_v16 = vadd.f32 %v997_v14, %v613_v12 }
 0x1c4   :  { %v617_v17 = vpop.f32.mrb[78].mxu1 }
 0x1c5   :  { %1164 = vst [vmem:[#allocation5 + $0x130] sm:$0xff] %v998_v16  ;;  %v618_v18 = vadd.f32 %v1754_v55, %v617_v17  ;;  %v619_v19 = vpop.f32.mrb[79].mxu1  ;;  %v1002_v20 = vpop.f32.mrb[78].mxu0 }
 0x1c6   :  { %v1004_v21 = vpop.f32.mrb[79].mxu0 }
 0x1c7   :  { %v1003_v22 = vadd.f32 %v1002_v20, %v618_v18 }
 0x1c8   :  { %v622_v23 = vpop.f32.mrb[80].mxu1 }
 0x1c9   :  { %1165 = vst [vmem:[#allocation5 + $0x138] sm:$0xff] %v1003_v22  ;;  %v623_v24 = vadd.f32 %v1754_v55, %v622_v23  ;;  %v624_v25 = vpop.f32.mrb[81].mxu1  ;;  %v1007_v26 = vpop.f32.mrb[80].mxu0 }
 0x1ca   :  { %v1009_v27 = vpop.f32.mrb[81].mxu0 }
 0x1cb   :  { %v1008_v28 = vadd.f32 %v1007_v26, %v623_v24 }
 0x1cc   :  { %v627_v29 = vpop.f32.mrb[82].mxu1 }
 0x1cd   :  { %1166 = vst [vmem:[#allocation5 + $0x140] sm:$0xff] %v1008_v28  ;;  %v628_v30 = vadd.f32 %v1754_v55, %v627_v29  ;;  %v629_v31 = vpop.f32.mrb[83].mxu1  ;;  %v1012_v32 = vpop.f32.mrb[82].mxu0 }
 0x1ce   :  { %v1014_v33 = vpop.f32.mrb[83].mxu0 }
 0x1cf   :  { %v1013_v34 = vadd.f32 %v1012_v32, %v628_v30 }
 0x1d0   :  { %v632_v35 = vpop.f32.mrb[84].mxu1 }
 0x1d1   :  { %1167 = vst [vmem:[#allocation5 + $0x148] sm:$0xff] %v1013_v34  ;;  %v633_v36 = vadd.f32 %v1754_v55, %v632_v35  ;;  %v634_v37 = vpop.f32.mrb[85].mxu1  ;;  %v1017_v38 = vpop.f32.mrb[84].mxu0 }
 0x1d2   :  { %v1019_v39 = vpop.f32.mrb[85].mxu0 }
 0x1d3   :  { %v1018_v40 = vadd.f32 %v1017_v38, %v633_v36 }
 0x1d4   :  { %v637_v41 = vpop.f32.mrb[86].mxu1 }
 0x1d5   :  { %1168 = vst [vmem:[#allocation5 + $0x150] sm:$0xff] %v1018_v40  ;;  %v638_v42 = vadd.f32 %v1754_v55, %v637_v41  ;;  %v639_v43 = vpop.f32.mrb[87].mxu1  ;;  %v1022_v44 = vpop.f32.mrb[86].mxu0 }
 0x1d6   :  { %v1024_v0 = vpop.f32.mrb[87].mxu0 }
 0x1d7   :  { %v1023_v45 = vadd.f32 %v1022_v44, %v638_v42 }
 0x1d8   :  { %v642_v46 = vpop.f32.mrb[88].mxu1 }
 0x1d9   :  { %1169 = vst [vmem:[#allocation5 + $0x158] sm:$0xff] %v1023_v45  ;;  %v643_v47 = vadd.f32 %v1754_v55, %v642_v46  ;;  %v644_v48 = vpop.f32.mrb[89].mxu1  ;;  %v1027_v49 = vpop.f32.mrb[88].mxu0 }
 0x1da   :  { %v1029_v50 = vpop.f32.mrb[89].mxu0 }
 0x1db   :  { %v1028_v51 = vadd.f32 %v1027_v49, %v643_v47 }
 0x1dc   :  { %v647_v52 = vpop.f32.mrb[90].mxu1 }
 0x1dd   :  { %1170 = vst [vmem:[#allocation5 + $0x160] sm:$0xff] %v1028_v51  ;;  %v648_v53 = vadd.f32 %v1754_v55, %v647_v52  ;;  %v649_v54 = vpop.f32.mrb[91].mxu1  ;;  %v1032_v56 = vpop.f32.mrb[90].mxu0 }
 0x1de   :  { %v1034_v57 = vpop.f32.mrb[91].mxu0 }
 0x1df   :  { %v1033_v58 = vadd.f32 %v1032_v56, %v648_v53 }
 0x1e0   :  { %v652_v59 = vpop.f32.mrb[92].mxu1 }
 0x1e1   :  { %1171 = vst [vmem:[#allocation5 + $0x168] sm:$0xff] %v1033_v58  ;;  %v653_v60 = vadd.f32 %v1754_v55, %v652_v59  ;;  %v654_v61 = vpop.f32.mrb[93].mxu1  ;;  %v1037_v62 = vpop.f32.mrb[92].mxu0 }
 0x1e2   :  { %v1039_v63 = vpop.f32.mrb[93].mxu0 }
 0x1e3   :  { %v1038_v1 = vadd.f32 %v1037_v62, %v653_v60 }
 0x1e4   :  { %v657_v2 = vpop.f32.mrb[94].mxu1 }
 0x1e5   :  { %1172 = vst [vmem:[#allocation5 + $0x170] sm:$0xff] %v1038_v1  ;;  %v658_v3 = vadd.f32 %v1754_v55, %v657_v2  ;;  %v659_v4 = vpop.f32.mrb[95].mxu1  ;;  %v1042_v5 = vpop.f32.mrb[94].mxu0 }
 0x1e6   :  { %v1044_v6 = vpop.f32.mrb[95].mxu0 }
 0x1e7   :  { %v1043_v7 = vadd.f32 %v1042_v5, %v658_v3 }
 0x1e8   :  { %v662_v8 = vpop.f32.mrb[96].mxu1 }
 0x1e9   :  { %1173 = vst [vmem:[#allocation5 + $0x178] sm:$0xff] %v1043_v7  ;;  %v663_v9 = vadd.f32 %v1754_v55, %v662_v8  ;;  %v664_v10 = vpop.f32.mrb[97].mxu1  ;;  %v1047_v11 = vpop.f32.mrb[96].mxu0 }
 0x1ea   :  { %v1049_v12 = vpop.f32.mrb[97].mxu0 }
 0x1eb   :  { %v1048_v13 = vadd.f32 %v1047_v11, %v663_v9 }
 0x1ec   :  { %v667_v14 = vpop.f32.mrb[98].mxu1 }
 0x1ed   :  { %1174 = vst [vmem:[#allocation5 + $0x180] sm:$0xff] %v1048_v13  ;;  %v668_v15 = vadd.f32 %v1754_v55, %v667_v14  ;;  %v669_v16 = vpop.f32.mrb[99].mxu1  ;;  %v1052_v17 = vpop.f32.mrb[98].mxu0 }
 0x1ee   :  { %v1054_v18 = vpop.f32.mrb[99].mxu0 }
 0x1ef   :  { %v1053_v19 = vadd.f32 %v1052_v17, %v668_v15 }
 0x1f0   :  { %v672_v20 = vpop.f32.mrb[100].mxu1 }
 0x1f1   :  { %1175 = vst [vmem:[#allocation5 + $0x188] sm:$0xff] %v1053_v19  ;;  %v673_v21 = vadd.f32 %v1754_v55, %v672_v20  ;;  %v674_v22 = vpop.f32.mrb[101].mxu1  ;;  %v1057_v23 = vpop.f32.mrb[100].mxu0 }
 0x1f2   :  { %v1059_v24 = vpop.f32.mrb[101].mxu0 }
 0x1f3   :  { %v1058_v25 = vadd.f32 %v1057_v23, %v673_v21  ;;  %v1439_v24 = vld [vmem:[%s1834_s2] ss:$0 sm:$0xff]  ;;  %s1462_s2 = scalar_lea.vmem %s1196_s18, 8192 }
 0x1f4   :  { %v677_v26 = vpop.f32.mrb[102].mxu1  ;;  %p1463_p8 = scmp.ne.s32.totalorder %s1196_s18, %s1462_s2  ;;  %p1468_p10 = scmp.lt.s32.totalorder %s1462_s2, %s1462_s2 }
 0x1f5   :  { %1176 = vst [vmem:[#allocation5 + $0x190] sm:$0xff] %v1058_v25  ;;  %v678_v27 = vadd.f32 %v1754_v55, %v677_v26  ;;  %v679_v28 = vpop.f32.mrb[103].mxu1  ;;  %v1062_v29 = vpop.f32.mrb[102].mxu0 }
 0x1f6   :  { %v1064_v30 = vpop.f32.mrb[103].mxu0  ;;  %p1469_p11 = por %p1468_p10, %p1467_p9 }
 0x1f7   :  { %v1063_v31 = vadd.f32 %v1062_v29, %v678_v27 }
 0x1f8   :  { %v682_v32 = vpop.f32.mrb[104].mxu1  ;;  %p1470_p12 = pnand %p1469_p11, %p1463_p8 }
 0x1f9   :  { %1177 = vst [vmem:[#allocation5 + $0x198] sm:$0xff] %v1063_v31  ;;  %v683_v33 = vadd.f32 %v1754_v55, %v682_v32  ;;  %v684_v34 = vpop.f32.mrb[105].mxu1  ;;  %v1067_v35 = vpop.f32.mrb[104].mxu0 }
 0x1fa   :  { %v1069_v36 = vpop.f32.mrb[105].mxu0 }
 0x1fb   :  { %v1068_v37 = vadd.f32 %v1067_v35, %v683_v33 }
 0x1fc   :  { %v687_v38 = vpop.f32.mrb[106].mxu1 }
 0x1fd   :  { %1178 = vst [vmem:[#allocation5 + $0x1a0] sm:$0xff] %v1068_v37  ;;  %v688_v39 = vadd.f32 %v1754_v55, %v687_v38  ;;  %v689_v40 = vpop.f32.mrb[107].mxu1  ;;  %v1072_v41 = vpop.f32.mrb[106].mxu0 }
 0x1fe   :  { %v1074_v42 = vpop.f32.mrb[107].mxu0 }
 0x1ff   :  { %v1073_v43 = vadd.f32 %v1072_v41, %v688_v39 }
 0x200   :  { %v692_v44 = vpop.f32.mrb[108].mxu1 }
 0x201   :  { %1179 = vst [vmem:[#allocation5 + $0x1a8] sm:$0xff] %v1073_v43  ;;  %v693_v0 = vadd.f32 %v1754_v55, %v692_v44  ;;  %v694_v45 = vpop.f32.mrb[109].mxu1  ;;  %v1077_v46 = vpop.f32.mrb[108].mxu0 }
 0x202   :  { %v1079_v47 = vpop.f32.mrb[109].mxu0 }
 0x203   :  { %v1078_v48 = vadd.f32 %v1077_v46, %v693_v0 }
 0x204   :  { %v697_v49 = vpop.f32.mrb[110].mxu1 }
 0x205   :  { %1180 = vst [vmem:[#allocation5 + $0x1b0] sm:$0xff] %v1078_v48  ;;  %v698_v50 = vadd.f32 %v1754_v55, %v697_v49  ;;  %v699_v51 = vpop.f32.mrb[111].mxu1  ;;  %v1082_v52 = vpop.f32.mrb[110].mxu0 }
 0x206   :  { %v1084_v53 = vpop.f32.mrb[111].mxu0 }
 0x207   :  { %v1083_v54 = vadd.f32 %v1082_v52, %v698_v50 }
 0x208   :  { %v702_v56 = vpop.f32.mrb[112].mxu1 }
 0x209   :  { %1181 = vst [vmem:[#allocation5 + $0x1b8] sm:$0xff] %v1083_v54  ;;  %v703_v57 = vadd.f32 %v1754_v55, %v702_v56  ;;  %v704_v58 = vpop.f32.mrb[113].mxu1  ;;  %v1087_v59 = vpop.f32.mrb[112].mxu0 }
 0x20a   :  { %v1089_v60 = vpop.f32.mrb[113].mxu0 }
 0x20b   :  { %v1088_v61 = vadd.f32 %v1087_v59, %v703_v57 }
 0x20c   :  { %v707_v62 = vpop.f32.mrb[114].mxu1 }
 0x20d   :  { %1182 = vst [vmem:[#allocation5 + $0x1c0] sm:$0xff] %v1088_v61  ;;  %v708_v63 = vadd.f32 %v1754_v55, %v707_v62  ;;  %v709_v1 = vpop.f32.mrb[115].mxu1  ;;  %v1092_v2 = vpop.f32.mrb[114].mxu0 }
 0x20e   :  { %v1094_v3 = vpop.f32.mrb[115].mxu0 }
 0x20f   :  { %v1093_v4 = vadd.f32 %v1092_v2, %v708_v63 }
 0x210   :  { %v712_v5 = vpop.f32.mrb[116].mxu1 }
 0x211   :  { %1183 = vst [vmem:[#allocation5 + $0x1c8] sm:$0xff] %v1093_v4  ;;  %v713_v6 = vadd.f32 %v1754_v55, %v712_v5  ;;  %v714_v7 = vpop.f32.mrb[117].mxu1  ;;  %v1097_v8 = vpop.f32.mrb[116].mxu0 }
 0x212   :  { %v1099_v9 = vpop.f32.mrb[117].mxu0 }
 0x213   :  { %v1098_v10 = vadd.f32 %v1097_v8, %v713_v6 }
 0x214   :  { %v717_v11 = vpop.f32.mrb[118].mxu1 }
 0x215   :  { %1184 = vst [vmem:[#allocation5 + $0x1d0] sm:$0xff] %v1098_v10  ;;  %v718_v12 = vadd.f32 %v1754_v55, %v717_v11  ;;  %v719_v13 = vpop.f32.mrb[119].mxu1  ;;  %v1102_v14 = vpop.f32.mrb[118].mxu0 }
 0x216   :  { %v1104_v15 = vpop.f32.mrb[119].mxu0 }
 0x217   :  { %v1103_v16 = vadd.f32 %v1102_v14, %v718_v12 }
 0x218   :  { %v722_v17 = vpop.f32.mrb[120].mxu1 }
 0x219   :  { %1185 = vst [vmem:[#allocation5 + $0x1d8] sm:$0xff] %v1103_v16  ;;  %v723_v18 = vadd.f32 %v1754_v55, %v722_v17  ;;  %v724_v19 = vpop.f32.mrb[121].mxu1  ;;  %v1107_v20 = vpop.f32.mrb[120].mxu0 }
 0x21a   :  { %v1109_v21 = vpop.f32.mrb[121].mxu0 }
 0x21b   :  { %v1108_v22 = vadd.f32 %v1107_v20, %v723_v18 }
 0x21c   :  { %v727_v23 = vpop.f32.mrb[122].mxu1 }
 0x21d   :  { %1186 = vst [vmem:[#allocation5 + $0x1e0] sm:$0xff] %v1108_v22  ;;  %v728_v25 = vadd.f32 %v1439_v24, %v727_v23  ;;  %v729_v26 = vpop.f32.mrb[123].mxu1  ;;  %v1112_v27 = vpop.f32.mrb[122].mxu0 }
 0x21e   :  { %v1114_v28 = vpop.f32.mrb[123].mxu0 }
 0x21f   :  { %v1113_v29 = vadd.f32 %v1112_v27, %v728_v25 }
 0x220   :  { %v732_v30 = vpop.f32.mrb[124].mxu1 }
 0x221   :  { %1187 = vst [vmem:[#allocation5 + $0x1e8] sm:$0xff] %v1113_v29  ;;  %v733_v31 = vadd.f32 %v1439_v24, %v732_v30  ;;  %v734_v32 = vpop.f32.mrb[125].mxu1  ;;  %v1117_v55 = vpop.f32.mrb[124].mxu0 }
 0x222   :  { %v1119_v33 = vpop.f32.mrb[125].mxu0 }
 0x223   :  { %v1118_v34 = vadd.f32 %v1117_v55, %v733_v31 }
 0x224   :  { %v737_v35 = vpop.f32.mrb[126].mxu1 }
 0x225   :  { %1188 = vst [vmem:[#allocation5 + $0x1f0] sm:$0xff] %v1118_v34  ;;  %v738_v36 = vadd.f32 %v1439_v24, %v737_v35  ;;  %v739_v37 = vpop.f32.mrb[127].mxu1  ;;  %v1122_v38 = vpop.f32.mrb[126].mxu0 }
 0x226   :  { %v1124_v39 = vpop.f32.mrb[127].mxu0 }
 0x227   :  { %v1123_v40 = vadd.f32 %v1122_v38, %v738_v36 }
 0x229   :  { %1189 = vst [vmem:[#allocation5 + $0x1f8] sm:$0xff] %v1123_v40 }
 0x22a   :  { %1473 = shalt.err (!%p1470_p12)
}
 0x22b   :  { %s1474_s21 = scalar_lea.hbm %s1835_s3, 8192 }
 0x22c   :  { %p1475_p13 = scmp.ne.s32.totalorder %s1835_s3, %s1474_s21  ;;  %p1478_p0 = scmp.lt.u32.totalorder %s1474_s21, %s1835_s3 }
 0x22e   :  { %p1480_p1 = pnand %p1478_p0, %p1475_p13 }
 0x230   :  { %1483 = shalt.err (!%p1480_p1)
}
 0x231   :  { %s1493_s26 = smov 128   ;;  %s1494_s27 = smov 8  }
 0x232   :  { %1201 = dma.vmem_to_hbm [thread:$0]  %s1196_s18, 8192, %s1835_s3, [#allocation4], %s1493_s26, %s1493_s26, %s1494_s27  }
 0x233   :  { %1486 = dma.done.wait [#allocation4], 8192  }
 0x234   :  { %1487 = vsyncadd [#allocation4], 4294959104 }
 0x235   :  { %1205 = vsyncpa [#allocation3], 1 }
 0x236   :  { %1206 = vsyncpa [#allocation4], 1 }

</bundles_post_ra>
